<compile_context>
chip_gen: v6e
topology: v6e:2x2x1
jax: 0.10.0
libtpu: 0.0.40
codegen_flags: <defaults>
</compile_context>

<pallas_src>
import functools

import jax
import jax.numpy as jnp
import numpy as np
from jax.experimental import pallas as pl
from jax.experimental.pallas import tpu as pltpu

NUM_PARTS = 6
BN_EPS = 1e-5   # PyTorch BatchNorm2d default
LANE = 128


def _round_up(n, m):
    return ((n + m - 1) // m) * m


def _pcb_fused_kernel(stripes_ref, xg_ref, w_local_ref, gamma_ref, beta_ref,
                      w_eff_ref, b_eff_ref, cm_w_ref, inst_b_ref, merge_b_ref,
                      c_ref, merge_ref, *, c_width, merge_start):
    """All 6 parts in one invocation; every weight tile is VMEM-resident.

    stripes_ref : (6, B, C)   AdaptiveAvgPool2d((6,1)) stripes
    xg_ref      : (B, C)      global (1,1)-pooled features (mean of the 6 stripes)
    w_local_ref : (6, C, F)   per-part 1x1-conv weights           (matmul dtype)
    gamma/beta  : (6, 1, F)   BN affine params                    (f32)
    w_eff_ref   : (6, 1, C)   collapsed affine dy-head weights    (f32)
    b_eff_ref   : (6, 1, 1)   collapsed affine dy-head biases     (f32)
    cm_w_ref    : (6, F, Wcls) fused [instance_i | merge_i] RHS   (matmul dtype)
    inst_b_ref  : (6, 1, Wc)  instance bias (lane-padded)
    merge_b_ref : (1, Wm)     merge bias (lane-placed)
    c_ref       : (6, B, Wc)  out: per-part logits (padded lanes sliced off in wrapper)
    merge_ref   : (B, Wm)     out: merge logits (lane window sliced off in wrapper)
    """
    xg = xg_ref[...]                                          # (B, C) f32
    merge_acc = jnp.zeros(merge_ref.shape, jnp.float32)

    for i in range(NUM_PARTS):
        part = stripes_ref[i]                                 # (B, C)
        w = w_local_ref[i]                                    # (C, F)

        # ClassBlock i: 1x1 conv (no bias) + BatchNorm2d in training mode (batch stats)
        y = jnp.dot(part.astype(w.dtype), w, preferred_element_type=jnp.float32)
        mu = jnp.mean(y, axis=0, keepdims=True)
        var = jnp.mean((y - mu) ** 2, axis=0, keepdims=True)
        feat = (y - mu) * jax.lax.rsqrt(var + BN_EPS) * gamma_ref[i] + beta_ref[i]

        # dy_weight_i head collapsed to one affine map; VPU mul + XLU lane-reduce
        # (keeps the MXU free, no N=1 matmul pass).
        dw = jnp.sum(xg * w_eff_ref[i], axis=-1, keepdims=True) + b_eff_ref[i]   # (B,1)

        # Fused classifier epilogue: one RHS = [instance_i | instance_merge slice].
        # (feat * dw) @ merge_w_i == dw * (feat @ merge_w_i) since dw is a per-row scalar.
        cw = cm_w_ref[i]                                      # (F, Wcls)
        z = jnp.dot(feat.astype(cw.dtype), cw, preferred_element_type=jnp.float32)
        c_ref[i] = (z[:, :c_width] + inst_b_ref[i]).astype(c_ref.dtype)
        merge_acc = merge_acc + dw * z[:, merge_start:]

    merge_ref[...] = (merge_acc + merge_b_ref[...]).astype(merge_ref.dtype)


def pcb_forward(x, p, *, weight_dtype=jnp.float32):
    """PCB forward (training branch). Returns (c0..c5, pcb_merge_feat_train)."""
    B, C, H, W = x.shape
    assert H % NUM_PARTS == 0, "H must be divisible by 6 (uniform AdaptiveAvgPool stripes)"
    hs = H // NUM_PARTS
    F = p["w_local"].shape[2]
    NC = p["inst_w"].shape[2]

    # --- Pooling stage in plain XLA (kernel never touches the big NCHW tensor) ---
    stripes = x.reshape(B, C, NUM_PARTS, hs, W).mean(axis=(3, 4))   # (B, C, 6)
    stripes_p = jnp.transpose(stripes, (2, 0, 1))                   # (6, B, C)
    xg = stripes.mean(axis=2)                                       # (B, C)

    # --- Collapse the purely-affine dy_weight head (no activations in the Sequential):
    #     dw_i = xg @ (W1 W2 W3 L)_i + (((b1 W2 + b2) W3 + b3) L + lb)_i
    t = jnp.einsum("pcf,pfg->pcg", p["dy_w1"], p["dy_w2"])
    t = jnp.einsum("pcg,pgf->pcf", t, p["dy_w3"])
    w_eff = jnp.einsum("pcf,pfo->pco", t, p["dy_lw"])               # (6, C, 1)
    b = jnp.einsum("pif,pfg->pig", p["dy_b1"], p["dy_w2"]) + p["dy_b2"]
    b = jnp.einsum("pig,pgf->pif", b, p["dy_w3"]) + p["dy_b3"]
    b_eff = jnp.einsum("pif,pfo->pio", b, p["dy_lw"]) + p["dy_lb"]  # (6, 1, 1)
    w_eff_t = jnp.transpose(w_eff, (0, 2, 1)).astype(jnp.float32)   # (6, 1, C)

    # --- Fused [instance_i | instance_merge_i] classifier RHS, lane-dense layout ---
    NCp = _round_up(NC, LANE)
    if 2 * NC <= LANE:
        # Pack both halves into a single 128-lane block (no 87.5%-zero padding).
        w_cls, c_width, merge_start, merge_off = LANE, LANE, 0, NC
        cm_w = jnp.concatenate(
            [p["inst_w"], p["merge_w"],
             jnp.zeros((NUM_PARTS, F, LANE - 2 * NC), p["inst_w"].dtype)], axis=-1)
        inst_b_p = jnp.pad(p["inst_b"], [(0, 0), (0, 0), (0, LANE - NC)])
        merge_b_p = jnp.pad(p["merge_b"], [(0, 0), (NC, LANE - 2 * NC)])
    else:
        # Realistic NC: pad each half to a multiple of 128 lanes.
        w_cls, c_width, merge_start, merge_off = 2 * NCp, NCp, NCp, 0
        pad3 = [(0, 0), (0, 0), (0, NCp - NC)]
        cm_w = jnp.concatenate([jnp.pad(p["inst_w"], pad3),
                                jnp.pad(p["merge_w"], pad3)], axis=-1)
        inst_b_p = jnp.pad(p["inst_b"], pad3)
        merge_b_p = jnp.pad(p["merge_b"], [(0, 0), (0, NCp - NC)])
    w_merge = w_cls - merge_start

    # --- Pre-cast the matmul weights once in the wrapper (bf16 halves weight bytes);
    #     BN / VPU math and biases stay f32.
    w_local = p["w_local"].astype(weight_dtype)
    cm_w = cm_w.astype(weight_dtype)

    args = (stripes_p, xg, w_local, p["gamma"], p["beta"],
            w_eff_t, b_eff, cm_w, inst_b_p, merge_b_p)

    # VMEM budget: actual working set + headroom (was a fixed 48 MiB).
    vmem_bytes = sum(int(a.size) * a.dtype.itemsize for a in args)
    vmem_bytes += (NUM_PARTS * B * c_width + B * w_merge) * 4
    vmem_limit = min(int(1.5 * vmem_bytes) + (2 << 20), 100 << 20)

    kernel = functools.partial(_pcb_fused_kernel,
                               c_width=c_width, merge_start=merge_start)
    vmem_spec = pl.BlockSpec(memory_space=pltpu.MemorySpace.VMEM)

    c_all, merge = pl.pallas_call(
        kernel,
        out_shape=(jax.ShapeDtypeStruct((NUM_PARTS, B, c_width), jnp.float32),
                   jax.ShapeDtypeStruct((B, w_merge), jnp.float32)),
        in_specs=[vmem_spec] * len(args),
        out_specs=(vmem_spec, vmem_spec),
        compiler_params=pltpu.CompilerParams(vmem_limit_bytes=vmem_limit),
    )(*args)

    c_all = c_all[:, :, :NC]
    merge = merge[:, merge_off:merge_off + NC]
    return tuple(c_all[i] for i in range(NUM_PARTS)) + (merge,)


def pcb_reference(x, p):
    """Pure-JAX reference of the same branch (faithful op ordering, for correctness)."""
    B, C, H, W = x.shape
    F = p["w_local"].shape[2]
    NC = p["inst_w"].shape[2]
    hs = H // NUM_PARTS
    xp = x.reshape(B, C, NUM_PARTS, hs, W).mean(axis=(3, 4))      # (B, C, 6)
    xg = xp.mean(axis=2)                                          # (B, C)
    cs, wfeats = [], []
    for i in range(NUM_PARTS):
        part = xp[:, :, i]
        y = part @ p["w_local"][i]
        mu = y.mean(0, keepdims=True)
        var = ((y - mu) ** 2).mean(0, keepdims=True)
        feat = (y - mu) / jnp.sqrt(var + BN_EPS) * p["gamma"][i] + p["beta"][i]
        h = xg @ p["dy_w1"][i] + p["dy_b1"][i]
        h = h @ p["dy_w2"][i] + p["dy_b2"][i]
        h = h @ p["dy_w3"][i] + p["dy_b3"][i]
        dwt = h @ p["dy_lw"][i] + p["dy_lb"][i]
        wfeats.append(feat * dwt)
        cs.append(feat @ p["inst_w"][i] + p["inst_b"][i])
    merge = (jnp.concatenate(wfeats, axis=1)
             @ p["merge_w"].reshape(NUM_PARTS * F, NC) + p["merge_b"][0])
    return tuple(cs) + (merge,)


def make_params(key, out_planes, num_features, num_classes):
    C, F, NC = out_planes, num_features, num_classes
    F16 = F // 16
    ks = jax.random.split(key, 12)
    nrm = jax.random.normal
    p = {
        # ClassBlock: conv (kaiming fan_in) + BN (gamma=1, beta=0)
        "w_local": nrm(ks[0], (NUM_PARTS, C, F), jnp.float32) * np.sqrt(2.0 / C),
        "gamma":   jnp.ones((NUM_PARTS, 1, F), jnp.float32),
        "beta":    jnp.zeros((NUM_PARTS, 1, F), jnp.float32),
        # dy_weight_i heads (deterministic synthetic init; module has NO activations here)
        "dy_w1": nrm(ks[1], (NUM_PARTS, C, F), jnp.float32) / np.sqrt(C),
        "dy_b1": nrm(ks[2], (NUM_PARTS, 1, F), jnp.float32) * 0.01,
        "dy_w2": nrm(ks[3], (NUM_PARTS, F, F16), jnp.float32) / np.sqrt(F),
        "dy_b2": nrm(ks[4], (NUM_PARTS, 1, F16), jnp.float32) * 0.01,
        "dy_w3": nrm(ks[5], (NUM_PARTS, F16, F), jnp.float32) / np.sqrt(F16),
        "dy_b3": nrm(ks[6], (NUM_PARTS, 1, F), jnp.float32) * 0.01,
        "dy_lw": nrm(ks[7], (NUM_PARTS, F, 1), jnp.float32) / np.sqrt(F),
        "dy_lb": nrm(ks[8], (NUM_PARTS, 1, 1), jnp.float32) * 0.01,
        # instance_i: normal(std=0.001), bias 0
        "inst_w": nrm(ks[9], (NUM_PARTS, F, NC), jnp.float32) * 1e-3,
        "inst_b": jnp.zeros((NUM_PARTS, 1, NC), jnp.float32),
        # instance_merge: weight (NC, 6F)^T stored as (6, F, NC), bias 0
        "merge_w": nrm(ks[10], (NUM_PARTS, F, NC), jnp.float32) * 1e-3,
        "merge_b": jnp.zeros((1, NC), jnp.float32),
    }
    return p


if __name__ == "__main__":
    # Small shapes consistent with the module: out_planes=64 channels,
    # num_features=64, num_classes=16, spatial 24x8 (H divisible by 6 parts).
    B, C, H, W = 4, 64, 24, 8
    F, NC = 64, 16

    key = jax.random.PRNGKey(0)
    kx, kp = jax.random.split(key)
    x = jax.random.normal(kx, (B, C, H, W), jnp.float32)
    params = make_params(kp, C, F, NC)

    refs = jax.block_until_ready(pcb_reference(x, params))

    # f32 weights: tight check against the faithful reference.
    outs = jax.block_until_ready(pcb_forward(x, params))
    for o, r in zip(outs, refs):
        np.testing.assert_allclose(np.asarray(o), np.asarray(r), rtol=2e-4, atol=1e-4)

    # bf16 weights (production recommendation: halves weight HBM->VMEM bytes);
    # BN batch stats shift slightly, so only a loose sanity check here.
    outs_bf16 = jax.block_until_ready(pcb_forward(x, params, weight_dtype=jnp.bfloat16))
    for o, r in zip(outs_bf16, refs):
        o_np = np.asarray(o)
        assert o_np.shape == np.asarray(r).shape
        assert np.all(np.isfinite(o_np))
        np.testing.assert_allclose(o_np, np.asarray(r), rtol=1e-1, atol=1e-1)

    print("KERNEL_OK")
</pallas_src>

<mosaic_0001>
module attributes {stable_mosaic.version = 11 : i64} {
  func.func @_pcb_fused_kernel(%arg0: memref<6x4x64xf32, #tpu.memory_space<vmem>>, %arg1: memref<4x64xf32, #tpu.memory_space<vmem>>, %arg2: memref<6x64x64xf32, #tpu.memory_space<vmem>>, %arg3: memref<6x1x64xf32, #tpu.memory_space<vmem>>, %arg4: memref<6x1x64xf32, #tpu.memory_space<vmem>>, %arg5: memref<6x1x64xf32, #tpu.memory_space<vmem>>, %arg6: memref<6x1x1xf32, #tpu.memory_space<vmem>>, %arg7: memref<6x64x128xf32, #tpu.memory_space<vmem>>, %arg8: memref<6x1x128xf32, #tpu.memory_space<vmem>>, %arg9: memref<1x128xf32, #tpu.memory_space<vmem>>, %arg10: memref<6x4x128xf32, #tpu.memory_space<vmem>>, %arg11: memref<4x128xf32, #tpu.memory_space<vmem>>) attributes {dimension_semantics = [], scalar_prefetch = 0 : i64, scratch_operands = 0 : i64, tpu.core_type = #tpu.core_type<tc>} {
    %c0 = arith.constant 0 : index
    %c0_0 = arith.constant 0 : index
    %0 = vector.load %arg1[%c0, %c0_0] : memref<4x64xf32, #tpu.memory_space<vmem>>, vector<4x64xf32>
    %cst = arith.constant 0.000000e+00 : f32
    %1 = vector.broadcast %cst : f32 to vector<4x128xf32>
    %c0_1 = arith.constant 0 : index
    %c0_2 = arith.constant 0 : index
    %c0_3 = arith.constant 0 : index
    %2 = vector.load %arg0[%c0_1, %c0_2, %c0_3] : memref<6x4x64xf32, #tpu.memory_space<vmem>>, vector<1x4x64xf32>
    %3 = vector.shape_cast %2 : vector<1x4x64xf32> to vector<4x64xf32>
    %c0_4 = arith.constant 0 : index
    %c0_5 = arith.constant 0 : index
    %c0_6 = arith.constant 0 : index
    %4 = vector.load %arg2[%c0_4, %c0_5, %c0_6] : memref<6x64x64xf32, #tpu.memory_space<vmem>>, vector<1x64x64xf32>
    %5 = vector.shape_cast %4 : vector<1x64x64xf32> to vector<64x64xf32>
    %cst_7 = arith.constant dense<0.000000e+00> : vector<4x64xf32>
    %6 = tpu.matmul %3, %5, %cst_7 {dimension_numbers = #tpu.dot_dimension_numbers<[1], [0], [0], [1], [0, 0, 1, 1], [], []>} : vector<4x64xf32>, vector<64x64xf32>, vector<4x64xf32> -> vector<4x64xf32>
    %cst_8 = arith.constant dense<0.000000e+00> : vector<64xf32>
    %7 = vector.multi_reduction <add>, %6, %cst_8 [0] : vector<4x64xf32> to vector<64xf32>
    %8 = vector.shape_cast %7 : vector<64xf32> to vector<1x64xf32>
    %cst_9 = arith.constant 4.000000e+00 : f32
    %9 = vector.broadcast %cst_9 : f32 to vector<1x64xf32>
    %10 = arith.divf %8, %9 : vector<1x64xf32>
    %11 = vector.broadcast %10 : vector<1x64xf32> to vector<4x64xf32>
    %12 = arith.subf %6, %11 : vector<4x64xf32>
    %13 = arith.mulf %12, %12 : vector<4x64xf32>
    %cst_10 = arith.constant dense<0.000000e+00> : vector<64xf32>
    %14 = vector.multi_reduction <add>, %13, %cst_10 [0] : vector<4x64xf32> to vector<64xf32>
    %15 = vector.shape_cast %14 : vector<64xf32> to vector<1x64xf32>
    %cst_11 = arith.constant 4.000000e+00 : f32
    %16 = vector.broadcast %cst_11 : f32 to vector<1x64xf32>
    %17 = arith.divf %15, %16 : vector<1x64xf32>
    %18 = vector.broadcast %10 : vector<1x64xf32> to vector<4x64xf32>
    %19 = arith.subf %6, %18 : vector<4x64xf32>
    %cst_12 = arith.constant 9.99999974E-6 : f32
    %20 = vector.broadcast %cst_12 : f32 to vector<1x64xf32>
    %21 = arith.addf %17, %20 : vector<1x64xf32>
    %22 = math.rsqrt %21 : vector<1x64xf32>
    %23 = vector.broadcast %22 : vector<1x64xf32> to vector<4x64xf32>
    %24 = arith.mulf %19, %23 : vector<4x64xf32>
    %c0_13 = arith.constant 0 : index
    %c0_14 = arith.constant 0 : index
    %c0_15 = arith.constant 0 : index
    %25 = vector.load %arg3[%c0_13, %c0_14, %c0_15] : memref<6x1x64xf32, #tpu.memory_space<vmem>>, vector<1x1x64xf32>
    %26 = vector.shape_cast %25 : vector<1x1x64xf32> to vector<1x64xf32>
    %27 = vector.broadcast %26 : vector<1x64xf32> to vector<4x64xf32>
    %28 = arith.mulf %24, %27 : vector<4x64xf32>
    %c0_16 = arith.constant 0 : index
    %c0_17 = arith.constant 0 : index
    %c0_18 = arith.constant 0 : index
    %29 = vector.load %arg4[%c0_16, %c0_17, %c0_18] : memref<6x1x64xf32, #tpu.memory_space<vmem>>, vector<1x1x64xf32>
    %30 = vector.shape_cast %29 : vector<1x1x64xf32> to vector<1x64xf32>
    %31 = vector.broadcast %30 : vector<1x64xf32> to vector<4x64xf32>
    %32 = arith.addf %28, %31 : vector<4x64xf32>
    %c0_19 = arith.constant 0 : index
    %c0_20 = arith.constant 0 : index
    %c0_21 = arith.constant 0 : index
    %33 = vector.load %arg5[%c0_19, %c0_20, %c0_21] : memref<6x1x64xf32, #tpu.memory_space<vmem>>, vector<1x1x64xf32>
    %34 = vector.shape_cast %33 : vector<1x1x64xf32> to vector<1x64xf32>
    %35 = vector.broadcast %34 : vector<1x64xf32> to vector<4x64xf32>
    %36 = arith.mulf %0, %35 : vector<4x64xf32>
    %cst_22 = arith.constant dense<0.000000e+00> : vector<4xf32>
    %37 = vector.multi_reduction <add>, %36, %cst_22 [1] : vector<4x64xf32> to vector<4xf32>
    %38 = vector.shape_cast %37 : vector<4xf32> to vector<4x1xf32>
    %c0_23 = arith.constant 0 : index
    %c0_24 = arith.constant 0 : index
    %c0_25 = arith.constant 0 : index
    %39 = vector.load %arg6[%c0_23, %c0_24, %c0_25] : memref<6x1x1xf32, #tpu.memory_space<vmem>>, vector<1x1x1xf32>
    %40 = vector.shape_cast %39 : vector<1x1x1xf32> to vector<1x1xf32>
    %41 = vector.broadcast %40 : vector<1x1xf32> to vector<4x1xf32>
    %42 = arith.addf %38, %41 : vector<4x1xf32>
    %c0_26 = arith.constant 0 : index
    %c0_27 = arith.constant 0 : index
    %c0_28 = arith.constant 0 : index
    %43 = vector.load %arg7[%c0_26, %c0_27, %c0_28] : memref<6x64x128xf32, #tpu.memory_space<vmem>>, vector<1x64x128xf32>
    %44 = vector.shape_cast %43 : vector<1x64x128xf32> to vector<64x128xf32>
    %cst_29 = arith.constant dense<0.000000e+00> : vector<4x128xf32>
    %45 = tpu.matmul %32, %44, %cst_29 {dimension_numbers = #tpu.dot_dimension_numbers<[1], [0], [0], [1], [0, 0, 1, 1], [], []>} : vector<4x64xf32>, vector<64x128xf32>, vector<4x128xf32> -> vector<4x128xf32>
    %c0_30 = arith.constant 0 : index
    %c0_31 = arith.constant 0 : index
    %c0_32 = arith.constant 0 : index
    %46 = vector.load %arg8[%c0_30, %c0_31, %c0_32] : memref<6x1x128xf32, #tpu.memory_space<vmem>>, vector<1x1x128xf32>
    %47 = vector.shape_cast %46 : vector<1x1x128xf32> to vector<1x128xf32>
    %48 = vector.broadcast %47 : vector<1x128xf32> to vector<4x128xf32>
    %49 = arith.addf %45, %48 : vector<4x128xf32>
    %c0_33 = arith.constant 0 : index
    %c0_34 = arith.constant 0 : index
    %c0_35 = arith.constant 0 : index
    %50 = vector.load %arg10[%c0_33, %c0_34, %c0_35] : memref<6x4x128xf32, #tpu.memory_space<vmem>>, vector<1x4x128xf32>
    %51 = vector.shape_cast %50 : vector<1x4x128xf32> to vector<4x128xf32>
    %52 = vector.shape_cast %49 : vector<4x128xf32> to vector<1x4x128xf32>
    tpu.vector_store %arg10[%c0_33, %c0_34, %c0_35], %52 {strides = array<i32>} : memref<6x4x128xf32, #tpu.memory_space<vmem>>, vector<1x4x128xf32>,
    %53 = vector.broadcast %42 : vector<4x1xf32> to vector<4x128xf32>
    %54 = arith.mulf %53, %45 : vector<4x128xf32>
    %55 = arith.addf %1, %54 : vector<4x128xf32>
    %c1 = arith.constant 1 : index
    %c0_36 = arith.constant 0 : index
    %c0_37 = arith.constant 0 : index
    %56 = vector.load %arg0[%c1, %c0_36, %c0_37] : memref<6x4x64xf32, #tpu.memory_space<vmem>>, vector<1x4x64xf32>
    %57 = vector.shape_cast %56 : vector<1x4x64xf32> to vector<4x64xf32>
    %c1_38 = arith.constant 1 : index
    %c0_39 = arith.constant 0 : index
    %c0_40 = arith.constant 0 : index
    %58 = vector.load %arg2[%c1_38, %c0_39, %c0_40] : memref<6x64x64xf32, #tpu.memory_space<vmem>>, vector<1x64x64xf32>
    %59 = vector.shape_cast %58 : vector<1x64x64xf32> to vector<64x64xf32>
    %cst_41 = arith.constant dense<0.000000e+00> : vector<4x64xf32>
    %60 = tpu.matmul %57, %59, %cst_41 {dimension_numbers = #tpu.dot_dimension_numbers<[1], [0], [0], [1], [0, 0, 1, 1], [], []>} : vector<4x64xf32>, vector<64x64xf32>, vector<4x64xf32> -> vector<4x64xf32>
    %cst_42 = arith.constant dense<0.000000e+00> : vector<64xf32>
    %61 = vector.multi_reduction <add>, %60, %cst_42 [0] : vector<4x64xf32> to vector<64xf32>
    %62 = vector.shape_cast %61 : vector<64xf32> to vector<1x64xf32>
    %cst_43 = arith.constant 4.000000e+00 : f32
    %63 = vector.broadcast %cst_43 : f32 to vector<1x64xf32>
    %64 = arith.divf %62, %63 : vector<1x64xf32>
    %65 = vector.broadcast %64 : vector<1x64xf32> to vector<4x64xf32>
    %66 = arith.subf %60, %65 : vector<4x64xf32>
    %67 = arith.mulf %66, %66 : vector<4x64xf32>
    %cst_44 = arith.constant dense<0.000000e+00> : vector<64xf32>
    %68 = vector.multi_reduction <add>, %67, %cst_44 [0] : vector<4x64xf32> to vector<64xf32>
    %69 = vector.shape_cast %68 : vector<64xf32> to vector<1x64xf32>
    %cst_45 = arith.constant 4.000000e+00 : f32
    %70 = vector.broadcast %cst_45 : f32 to vector<1x64xf32>
    %71 = arith.divf %69, %70 : vector<1x64xf32>
    %72 = vector.broadcast %64 : vector<1x64xf32> to vector<4x64xf32>
    %73 = arith.subf %60, %72 : vector<4x64xf32>
    %cst_46 = arith.constant 9.99999974E-6 : f32
    %74 = vector.broadcast %cst_46 : f32 to vector<1x64xf32>
    %75 = arith.addf %71, %74 : vector<1x64xf32>
    %76 = math.rsqrt %75 : vector<1x64xf32>
    %77 = vector.broadcast %76 : vector<1x64xf32> to vector<4x64xf32>
    %78 = arith.mulf %73, %77 : vector<4x64xf32>
    %c1_47 = arith.constant 1 : index
    %c0_48 = arith.constant 0 : index
    %c0_49 = arith.constant 0 : index
    %79 = vector.load %arg3[%c1_47, %c0_48, %c0_49] : memref<6x1x64xf32, #tpu.memory_space<vmem>>, vector<1x1x64xf32>
    %80 = vector.shape_cast %79 : vector<1x1x64xf32> to vector<1x64xf32>
    %81 = vector.broadcast %80 : vector<1x64xf32> to vector<4x64xf32>
    %82 = arith.mulf %78, %81 : vector<4x64xf32>
    %c1_50 = arith.constant 1 : index
    %c0_51 = arith.constant 0 : index
    %c0_52 = arith.constant 0 : index
    %83 = vector.load %arg4[%c1_50, %c0_51, %c0_52] : memref<6x1x64xf32, #tpu.memory_space<vmem>>, vector<1x1x64xf32>
    %84 = vector.shape_cast %83 : vector<1x1x64xf32> to vector<1x64xf32>
    %85 = vector.broadcast %84 : vector<1x64xf32> to vector<4x64xf32>
    %86 = arith.addf %82, %85 : vector<4x64xf32>
    %c1_53 = arith.constant 1 : index
    %c0_54 = arith.constant 0 : index
    %c0_55 = arith.constant 0 : index
    %87 = vector.load %arg5[%c1_53, %c0_54, %c0_55] : memref<6x1x64xf32, #tpu.memory_space<vmem>>, vector<1x1x64xf32>
    %88 = vector.shape_cast %87 : vector<1x1x64xf32> to vector<1x64xf32>
    %89 = vector.broadcast %88 : vector<1x64xf32> to vector<4x64xf32>
    %90 = arith.mulf %0, %89 : vector<4x64xf32>
    %cst_56 = arith.constant dense<0.000000e+00> : vector<4xf32>
    %91 = vector.multi_reduction <add>, %90, %cst_56 [1] : vector<4x64xf32> to vector<4xf32>
    %92 = vector.shape_cast %91 : vector<4xf32> to vector<4x1xf32>
    %c1_57 = arith.constant 1 : index
    %c0_58 = arith.constant 0 : index
    %c0_59 = arith.constant 0 : index
    %93 = vector.load %arg6[%c1_57, %c0_58, %c0_59] : memref<6x1x1xf32, #tpu.memory_space<vmem>>, vector<1x1x1xf32>
    %94 = vector.shape_cast %93 : vector<1x1x1xf32> to vector<1x1xf32>
    %95 = vector.broadcast %94 : vector<1x1xf32> to vector<4x1xf32>
    %96 = arith.addf %92, %95 : vector<4x1xf32>
    %c1_60 = arith.constant 1 : index
    %c0_61 = arith.constant 0 : index
    %c0_62 = arith.constant 0 : index
    %97 = vector.load %arg7[%c1_60, %c0_61, %c0_62] : memref<6x64x128xf32, #tpu.memory_space<vmem>>, vector<1x64x128xf32>
    %98 = vector.shape_cast %97 : vector<1x64x128xf32> to vector<64x128xf32>
    %cst_63 = arith.constant dense<0.000000e+00> : vector<4x128xf32>
    %99 = tpu.matmul %86, %98, %cst_63 {dimension_numbers = #tpu.dot_dimension_numbers<[1], [0], [0], [1], [0, 0, 1, 1], [], []>} : vector<4x64xf32>, vector<64x128xf32>, vector<4x128xf32> -> vector<4x128xf32>
    %c1_64 = arith.constant 1 : index
    %c0_65 = arith.constant 0 : index
    %c0_66 = arith.constant 0 : index
    %100 = vector.load %arg8[%c1_64, %c0_65, %c0_66] : memref<6x1x128xf32, #tpu.memory_space<vmem>>, vector<1x1x128xf32>
    %101 = vector.shape_cast %100 : vector<1x1x128xf32> to vector<1x128xf32>
    %102 = vector.broadcast %101 : vector<1x128xf32> to vector<4x128xf32>
    %103 = arith.addf %99, %102 : vector<4x128xf32>
    %c1_67 = arith.constant 1 : index
    %c0_68 = arith.constant 0 : index
    %c0_69 = arith.constant 0 : index
    %104 = vector.load %arg10[%c1_67, %c0_68, %c0_69] : memref<6x4x128xf32, #tpu.memory_space<vmem>>, vector<1x4x128xf32>
    %105 = vector.shape_cast %104 : vector<1x4x128xf32> to vector<4x128xf32>
    %106 = vector.shape_cast %103 : vector<4x128xf32> to vector<1x4x128xf32>
    tpu.vector_store %arg10[%c1_67, %c0_68, %c0_69], %106 {strides = array<i32>} : memref<6x4x128xf32, #tpu.memory_space<vmem>>, vector<1x4x128xf32>,
    %107 = vector.broadcast %96 : vector<4x1xf32> to vector<4x128xf32>
    %108 = arith.mulf %107, %99 : vector<4x128xf32>
    %109 = arith.addf %55, %108 : vector<4x128xf32>
    %c2 = arith.constant 2 : index
    %c0_70 = arith.constant 0 : index
    %c0_71 = arith.constant 0 : index
    %110 = vector.load %arg0[%c2, %c0_70, %c0_71] : memref<6x4x64xf32, #tpu.memory_space<vmem>>, vector<1x4x64xf32>
    %111 = vector.shape_cast %110 : vector<1x4x64xf32> to vector<4x64xf32>
    %c2_72 = arith.constant 2 : index
    %c0_73 = arith.constant 0 : index
    %c0_74 = arith.constant 0 : index
    %112 = vector.load %arg2[%c2_72, %c0_73, %c0_74] : memref<6x64x64xf32, #tpu.memory_space<vmem>>, vector<1x64x64xf32>
    %113 = vector.shape_cast %112 : vector<1x64x64xf32> to vector<64x64xf32>
    %cst_75 = arith.constant dense<0.000000e+00> : vector<4x64xf32>
    %114 = tpu.matmul %111, %113, %cst_75 {dimension_numbers = #tpu.dot_dimension_numbers<[1], [0], [0], [1], [0, 0, 1, 1], [], []>} : vector<4x64xf32>, vector<64x64xf32>, vector<4x64xf32> -> vector<4x64xf32>
    %cst_76 = arith.constant dense<0.000000e+00> : vector<64xf32>
    %115 = vector.multi_reduction <add>, %114, %cst_76 [0] : vector<4x64xf32> to vector<64xf32>
    %116 = vector.shape_cast %115 : vector<64xf32> to vector<1x64xf32>
    %cst_77 = arith.constant 4.000000e+00 : f32
    %117 = vector.broadcast %cst_77 : f32 to vector<1x64xf32>
    %118 = arith.divf %116, %117 : vector<1x64xf32>
    %119 = vector.broadcast %118 : vector<1x64xf32> to vector<4x64xf32>
    %120 = arith.subf %114, %119 : vector<4x64xf32>
    %121 = arith.mulf %120, %120 : vector<4x64xf32>
    %cst_78 = arith.constant dense<0.000000e+00> : vector<64xf32>
    %122 = vector.multi_reduction <add>, %121, %cst_78 [0] : vector<4x64xf32> to vector<64xf32>
    %123 = vector.shape_cast %122 : vector<64xf32> to vector<1x64xf32>
    %cst_79 = arith.constant 4.000000e+00 : f32
    %124 = vector.broadcast %cst_79 : f32 to vector<1x64xf32>
    %125 = arith.divf %123, %124 : vector<1x64xf32>
    %126 = vector.broadcast %118 : vector<1x64xf32> to vector<4x64xf32>
    %127 = arith.subf %114, %126 : vector<4x64xf32>
    %cst_80 = arith.constant 9.99999974E-6 : f32
    %128 = vector.broadcast %cst_80 : f32 to vector<1x64xf32>
    %129 = arith.addf %125, %128 : vector<1x64xf32>
    %130 = math.rsqrt %129 : vector<1x64xf32>
    %131 = vector.broadcast %130 : vector<1x64xf32> to vector<4x64xf32>
    %132 = arith.mulf %127, %131 : vector<4x64xf32>
    %c2_81 = arith.constant 2 : index
    %c0_82 = arith.constant 0 : index
    %c0_83 = arith.constant 0 : index
    %133 = vector.load %arg3[%c2_81, %c0_82, %c0_83] : memref<6x1x64xf32, #tpu.memory_space<vmem>>, vector<1x1x64xf32>
    %134 = vector.shape_cast %133 : vector<1x1x64xf32> to vector<1x64xf32>
    %135 = vector.broadcast %134 : vector<1x64xf32> to vector<4x64xf32>
    %136 = arith.mulf %132, %135 : vector<4x64xf32>
    %c2_84 = arith.constant 2 : index
    %c0_85 = arith.constant 0 : index
    %c0_86 = arith.constant 0 : index
    %137 = vector.load %arg4[%c2_84, %c0_85, %c0_86] : memref<6x1x64xf32, #tpu.memory_space<vmem>>, vector<1x1x64xf32>
    %138 = vector.shape_cast %137 : vector<1x1x64xf32> to vector<1x64xf32>
    %139 = vector.broadcast %138 : vector<1x64xf32> to vector<4x64xf32>
    %140 = arith.addf %136, %139 : vector<4x64xf32>
    %c2_87 = arith.constant 2 : index
    %c0_88 = arith.constant 0 : index
    %c0_89 = arith.constant 0 : index
    %141 = vector.load %arg5[%c2_87, %c0_88, %c0_89] : memref<6x1x64xf32, #tpu.memory_space<vmem>>, vector<1x1x64xf32>
    %142 = vector.shape_cast %141 : vector<1x1x64xf32> to vector<1x64xf32>
    %143 = vector.broadcast %142 : vector<1x64xf32> to vector<4x64xf32>
    %144 = arith.mulf %0, %143 : vector<4x64xf32>
    %cst_90 = arith.constant dense<0.000000e+00> : vector<4xf32>
    %145 = vector.multi_reduction <add>, %144, %cst_90 [1] : vector<4x64xf32> to vector<4xf32>
    %146 = vector.shape_cast %145 : vector<4xf32> to vector<4x1xf32>
    %c2_91 = arith.constant 2 : index
    %c0_92 = arith.constant 0 : index
    %c0_93 = arith.constant 0 : index
    %147 = vector.load %arg6[%c2_91, %c0_92, %c0_93] : memref<6x1x1xf32, #tpu.memory_space<vmem>>, vector<1x1x1xf32>
    %148 = vector.shape_cast %147 : vector<1x1x1xf32> to vector<1x1xf32>
    %149 = vector.broadcast %148 : vector<1x1xf32> to vector<4x1xf32>
    %150 = arith.addf %146, %149 : vector<4x1xf32>
    %c2_94 = arith.constant 2 : index
    %c0_95 = arith.constant 0 : index
    %c0_96 = arith.constant 0 : index
    %151 = vector.load %arg7[%c2_94, %c0_95, %c0_96] : memref<6x64x128xf32, #tpu.memory_space<vmem>>, vector<1x64x128xf32>
    %152 = vector.shape_cast %151 : vector<1x64x128xf32> to vector<64x128xf32>
    %cst_97 = arith.constant dense<0.000000e+00> : vector<4x128xf32>
    %153 = tpu.matmul %140, %152, %cst_97 {dimension_numbers = #tpu.dot_dimension_numbers<[1], [0], [0], [1], [0, 0, 1, 1], [], []>} : vector<4x64xf32>, vector<64x128xf32>, vector<4x128xf32> -> vector<4x128xf32>
    %c2_98 = arith.constant 2 : index
    %c0_99 = arith.constant 0 : index
    %c0_100 = arith.constant 0 : index
    %154 = vector.load %arg8[%c2_98, %c0_99, %c0_100] : memref<6x1x128xf32, #tpu.memory_space<vmem>>, vector<1x1x128xf32>
    %155 = vector.shape_cast %154 : vector<1x1x128xf32> to vector<1x128xf32>
    %156 = vector.broadcast %155 : vector<1x128xf32> to vector<4x128xf32>
    %157 = arith.addf %153, %156 : vector<4x128xf32>
    %c2_101 = arith.constant 2 : index
    %c0_102 = arith.constant 0 : index
    %c0_103 = arith.constant 0 : index
    %158 = vector.load %arg10[%c2_101, %c0_102, %c0_103] : memref<6x4x128xf32, #tpu.memory_space<vmem>>, vector<1x4x128xf32>
    %159 = vector.shape_cast %158 : vector<1x4x128xf32> to vector<4x128xf32>
    %160 = vector.shape_cast %157 : vector<4x128xf32> to vector<1x4x128xf32>
    tpu.vector_store %arg10[%c2_101, %c0_102, %c0_103], %160 {strides = array<i32>} : memref<6x4x128xf32, #tpu.memory_space<vmem>>, vector<1x4x128xf32>,
    %161 = vector.broadcast %150 : vector<4x1xf32> to vector<4x128xf32>
    %162 = arith.mulf %161, %153 : vector<4x128xf32>
    %163 = arith.addf %109, %162 : vector<4x128xf32>
    %c3 = arith.constant 3 : index
    %c0_104 = arith.constant 0 : index
    %c0_105 = arith.constant 0 : index
    %164 = vector.load %arg0[%c3, %c0_104, %c0_105] : memref<6x4x64xf32, #tpu.memory_space<vmem>>, vector<1x4x64xf32>
    %165 = vector.shape_cast %164 : vector<1x4x64xf32> to vector<4x64xf32>
    %c3_106 = arith.constant 3 : index
    %c0_107 = arith.constant 0 : index
    %c0_108 = arith.constant 0 : index
    %166 = vector.load %arg2[%c3_106, %c0_107, %c0_108] : memref<6x64x64xf32, #tpu.memory_space<vmem>>, vector<1x64x64xf32>
    %167 = vector.shape_cast %166 : vector<1x64x64xf32> to vector<64x64xf32>
    %cst_109 = arith.constant dense<0.000000e+00> : vector<4x64xf32>
    %168 = tpu.matmul %165, %167, %cst_109 {dimension_numbers = #tpu.dot_dimension_numbers<[1], [0], [0], [1], [0, 0, 1, 1], [], []>} : vector<4x64xf32>, vector<64x64xf32>, vector<4x64xf32> -> vector<4x64xf32>
    %cst_110 = arith.constant dense<0.000000e+00> : vector<64xf32>
    %169 = vector.multi_reduction <add>, %168, %cst_110 [0] : vector<4x64xf32> to vector<64xf32>
    %170 = vector.shape_cast %169 : vector<64xf32> to vector<1x64xf32>
    %cst_111 = arith.constant 4.000000e+00 : f32
    %171 = vector.broadcast %cst_111 : f32 to vector<1x64xf32>
    %172 = arith.divf %170, %171 : vector<1x64xf32>
    %173 = vector.broadcast %172 : vector<1x64xf32> to vector<4x64xf32>
    %174 = arith.subf %168, %173 : vector<4x64xf32>
    %175 = arith.mulf %174, %174 : vector<4x64xf32>
    %cst_112 = arith.constant dense<0.000000e+00> : vector<64xf32>
    %176 = vector.multi_reduction <add>, %175, %cst_112 [0] : vector<4x64xf32> to vector<64xf32>
    %177 = vector.shape_cast %176 : vector<64xf32> to vector<1x64xf32>
    %cst_113 = arith.constant 4.000000e+00 : f32
    %178 = vector.broadcast %cst_113 : f32 to vector<1x64xf32>
    %179 = arith.divf %177, %178 : vector<1x64xf32>
    %180 = vector.broadcast %172 : vector<1x64xf32> to vector<4x64xf32>
    %181 = arith.subf %168, %180 : vector<4x64xf32>
    %cst_114 = arith.constant 9.99999974E-6 : f32
    %182 = vector.broadcast %cst_114 : f32 to vector<1x64xf32>
    %183 = arith.addf %179, %182 : vector<1x64xf32>
    %184 = math.rsqrt %183 : vector<1x64xf32>
    %185 = vector.broadcast %184 : vector<1x64xf32> to vector<4x64xf32>
    %186 = arith.mulf %181, %185 : vector<4x64xf32>
    %c3_115 = arith.constant 3 : index
    %c0_116 = arith.constant 0 : index
    %c0_117 = arith.constant 0 : index
    %187 = vector.load %arg3[%c3_115, %c0_116, %c0_117] : memref<6x1x64xf32, #tpu.memory_space<vmem>>, vector<1x1x64xf32>
    %188 = vector.shape_cast %187 : vector<1x1x64xf32> to vector<1x64xf32>
    %189 = vector.broadcast %188 : vector<1x64xf32> to vector<4x64xf32>
    %190 = arith.mulf %186, %189 : vector<4x64xf32>
    %c3_118 = arith.constant 3 : index
    %c0_119 = arith.constant 0 : index
    %c0_120 = arith.constant 0 : index
    %191 = vector.load %arg4[%c3_118, %c0_119, %c0_120] : memref<6x1x64xf32, #tpu.memory_space<vmem>>, vector<1x1x64xf32>
    %192 = vector.shape_cast %191 : vector<1x1x64xf32> to vector<1x64xf32>
    %193 = vector.broadcast %192 : vector<1x64xf32> to vector<4x64xf32>
    %194 = arith.addf %190, %193 : vector<4x64xf32>
    %c3_121 = arith.constant 3 : index
    %c0_122 = arith.constant 0 : index
    %c0_123 = arith.constant 0 : index
    %195 = vector.load %arg5[%c3_121, %c0_122, %c0_123] : memref<6x1x64xf32, #tpu.memory_space<vmem>>, vector<1x1x64xf32>
    %196 = vector.shape_cast %195 : vector<1x1x64xf32> to vector<1x64xf32>
    %197 = vector.broadcast %196 : vector<1x64xf32> to vector<4x64xf32>
    %198 = arith.mulf %0, %197 : vector<4x64xf32>
    %cst_124 = arith.constant dense<0.000000e+00> : vector<4xf32>
    %199 = vector.multi_reduction <add>, %198, %cst_124 [1] : vector<4x64xf32> to vector<4xf32>
    %200 = vector.shape_cast %199 : vector<4xf32> to vector<4x1xf32>
    %c3_125 = arith.constant 3 : index
    %c0_126 = arith.constant 0 : index
    %c0_127 = arith.constant 0 : index
    %201 = vector.load %arg6[%c3_125, %c0_126, %c0_127] : memref<6x1x1xf32, #tpu.memory_space<vmem>>, vector<1x1x1xf32>
    %202 = vector.shape_cast %201 : vector<1x1x1xf32> to vector<1x1xf32>
    %203 = vector.broadcast %202 : vector<1x1xf32> to vector<4x1xf32>
    %204 = arith.addf %200, %203 : vector<4x1xf32>
    %c3_128 = arith.constant 3 : index
    %c0_129 = arith.constant 0 : index
    %c0_130 = arith.constant 0 : index
    %205 = vector.load %arg7[%c3_128, %c0_129, %c0_130] : memref<6x64x128xf32, #tpu.memory_space<vmem>>, vector<1x64x128xf32>
    %206 = vector.shape_cast %205 : vector<1x64x128xf32> to vector<64x128xf32>
    %cst_131 = arith.constant dense<0.000000e+00> : vector<4x128xf32>
    %207 = tpu.matmul %194, %206, %cst_131 {dimension_numbers = #tpu.dot_dimension_numbers<[1], [0], [0], [1], [0, 0, 1, 1], [], []>} : vector<4x64xf32>, vector<64x128xf32>, vector<4x128xf32> -> vector<4x128xf32>
    %c3_132 = arith.constant 3 : index
    %c0_133 = arith.constant 0 : index
    %c0_134 = arith.constant 0 : index
    %208 = vector.load %arg8[%c3_132, %c0_133, %c0_134] : memref<6x1x128xf32, #tpu.memory_space<vmem>>, vector<1x1x128xf32>
    %209 = vector.shape_cast %208 : vector<1x1x128xf32> to vector<1x128xf32>
    %210 = vector.broadcast %209 : vector<1x128xf32> to vector<4x128xf32>
    %211 = arith.addf %207, %210 : vector<4x128xf32>
    %c3_135 = arith.constant 3 : index
    %c0_136 = arith.constant 0 : index
    %c0_137 = arith.constant 0 : index
    %212 = vector.load %arg10[%c3_135, %c0_136, %c0_137] : memref<6x4x128xf32, #tpu.memory_space<vmem>>, vector<1x4x128xf32>
    %213 = vector.shape_cast %212 : vector<1x4x128xf32> to vector<4x128xf32>
    %214 = vector.shape_cast %211 : vector<4x128xf32> to vector<1x4x128xf32>
    tpu.vector_store %arg10[%c3_135, %c0_136, %c0_137], %214 {strides = array<i32>} : memref<6x4x128xf32, #tpu.memory_space<vmem>>, vector<1x4x128xf32>,
    %215 = vector.broadcast %204 : vector<4x1xf32> to vector<4x128xf32>
    %216 = arith.mulf %215, %207 : vector<4x128xf32>
    %217 = arith.addf %163, %216 : vector<4x128xf32>
    %c4 = arith.constant 4 : index
    %c0_138 = arith.constant 0 : index
    %c0_139 = arith.constant 0 : index
    %218 = vector.load %arg0[%c4, %c0_138, %c0_139] : memref<6x4x64xf32, #tpu.memory_space<vmem>>, vector<1x4x64xf32>
    %219 = vector.shape_cast %218 : vector<1x4x64xf32> to vector<4x64xf32>
    %c4_140 = arith.constant 4 : index
    %c0_141 = arith.constant 0 : index
    %c0_142 = arith.constant 0 : index
    %220 = vector.load %arg2[%c4_140, %c0_141, %c0_142] : memref<6x64x64xf32, #tpu.memory_space<vmem>>, vector<1x64x64xf32>
    %221 = vector.shape_cast %220 : vector<1x64x64xf32> to vector<64x64xf32>
    %cst_143 = arith.constant dense<0.000000e+00> : vector<4x64xf32>
    %222 = tpu.matmul %219, %221, %cst_143 {dimension_numbers = #tpu.dot_dimension_numbers<[1], [0], [0], [1], [0, 0, 1, 1], [], []>} : vector<4x64xf32>, vector<64x64xf32>, vector<4x64xf32> -> vector<4x64xf32>
    %cst_144 = arith.constant dense<0.000000e+00> : vector<64xf32>
    %223 = vector.multi_reduction <add>, %222, %cst_144 [0] : vector<4x64xf32> to vector<64xf32>
    %224 = vector.shape_cast %223 : vector<64xf32> to vector<1x64xf32>
    %cst_145 = arith.constant 4.000000e+00 : f32
    %225 = vector.broadcast %cst_145 : f32 to vector<1x64xf32>
    %226 = arith.divf %224, %225 : vector<1x64xf32>
    %227 = vector.broadcast %226 : vector<1x64xf32> to vector<4x64xf32>
    %228 = arith.subf %222, %227 : vector<4x64xf32>
    %229 = arith.mulf %228, %228 : vector<4x64xf32>
    %cst_146 = arith.constant dense<0.000000e+00> : vector<64xf32>
    %230 = vector.multi_reduction <add>, %229, %cst_146 [0] : vector<4x64xf32> to vector<64xf32>
    %231 = vector.shape_cast %230 : vector<64xf32> to vector<1x64xf32>
    %cst_147 = arith.constant 4.000000e+00 : f32
    %232 = vector.broadcast %cst_147 : f32 to vector<1x64xf32>
    %233 = arith.divf %231, %232 : vector<1x64xf32>
    %234 = vector.broadcast %226 : vector<1x64xf32> to vector<4x64xf32>
    %235 = arith.subf %222, %234 : vector<4x64xf32>
    %cst_148 = arith.constant 9.99999974E-6 : f32
    %236 = vector.broadcast %cst_148 : f32 to vector<1x64xf32>
    %237 = arith.addf %233, %236 : vector<1x64xf32>
    %238 = math.rsqrt %237 : vector<1x64xf32>
    %239 = vector.broadcast %238 : vector<1x64xf32> to vector<4x64xf32>
    %240 = arith.mulf %235, %239 : vector<4x64xf32>
    %c4_149 = arith.constant 4 : index
    %c0_150 = arith.constant 0 : index
    %c0_151 = arith.constant 0 : index
    %241 = vector.load %arg3[%c4_149, %c0_150, %c0_151] : memref<6x1x64xf32, #tpu.memory_space<vmem>>, vector<1x1x64xf32>
    %242 = vector.shape_cast %241 : vector<1x1x64xf32> to vector<1x64xf32>
    %243 = vector.broadcast %242 : vector<1x64xf32> to vector<4x64xf32>
    %244 = arith.mulf %240, %243 : vector<4x64xf32>
    %c4_152 = arith.constant 4 : index
    %c0_153 = arith.constant 0 : index
    %c0_154 = arith.constant 0 : index
    %245 = vector.load %arg4[%c4_152, %c0_153, %c0_154] : memref<6x1x64xf32, #tpu.memory_space<vmem>>, vector<1x1x64xf32>
    %246 = vector.shape_cast %245 : vector<1x1x64xf32> to vector<1x64xf32>
    %247 = vector.broadcast %246 : vector<1x64xf32> to vector<4x64xf32>
    %248 = arith.addf %244, %247 : vector<4x64xf32>
    %c4_155 = arith.constant 4 : index
    %c0_156 = arith.constant 0 : index
    %c0_157 = arith.constant 0 : index
    %249 = vector.load %arg5[%c4_155, %c0_156, %c0_157] : memref<6x1x64xf32, #tpu.memory_space<vmem>>, vector<1x1x64xf32>
    %250 = vector.shape_cast %249 : vector<1x1x64xf32> to vector<1x64xf32>
    %251 = vector.broadcast %250 : vector<1x64xf32> to vector<4x64xf32>
    %252 = arith.mulf %0, %251 : vector<4x64xf32>
    %cst_158 = arith.constant dense<0.000000e+00> : vector<4xf32>
    %253 = vector.multi_reduction <add>, %252, %cst_158 [1] : vector<4x64xf32> to vector<4xf32>
    %254 = vector.shape_cast %253 : vector<4xf32> to vector<4x1xf32>
    %c4_159 = arith.constant 4 : index
    %c0_160 = arith.constant 0 : index
    %c0_161 = arith.constant 0 : index
    %255 = vector.load %arg6[%c4_159, %c0_160, %c0_161] : memref<6x1x1xf32, #tpu.memory_space<vmem>>, vector<1x1x1xf32>
    %256 = vector.shape_cast %255 : vector<1x1x1xf32> to vector<1x1xf32>
    %257 = vector.broadcast %256 : vector<1x1xf32> to vector<4x1xf32>
    %258 = arith.addf %254, %257 : vector<4x1xf32>
    %c4_162 = arith.constant 4 : index
    %c0_163 = arith.constant 0 : index
    %c0_164 = arith.constant 0 : index
    %259 = vector.load %arg7[%c4_162, %c0_163, %c0_164] : memref<6x64x128xf32, #tpu.memory_space<vmem>>, vector<1x64x128xf32>
    %260 = vector.shape_cast %259 : vector<1x64x128xf32> to vector<64x128xf32>
    %cst_165 = arith.constant dense<0.000000e+00> : vector<4x128xf32>
    %261 = tpu.matmul %248, %260, %cst_165 {dimension_numbers = #tpu.dot_dimension_numbers<[1], [0], [0], [1], [0, 0, 1, 1], [], []>} : vector<4x64xf32>, vector<64x128xf32>, vector<4x128xf32> -> vector<4x128xf32>
    %c4_166 = arith.constant 4 : index
    %c0_167 = arith.constant 0 : index
    %c0_168 = arith.constant 0 : index
    %262 = vector.load %arg8[%c4_166, %c0_167, %c0_168] : memref<6x1x128xf32, #tpu.memory_space<vmem>>, vector<1x1x128xf32>
    %263 = vector.shape_cast %262 : vector<1x1x128xf32> to vector<1x128xf32>
    %264 = vector.broadcast %263 : vector<1x128xf32> to vector<4x128xf32>
    %265 = arith.addf %261, %264 : vector<4x128xf32>
    %c4_169 = arith.constant 4 : index
    %c0_170 = arith.constant 0 : index
    %c0_171 = arith.constant 0 : index
    %266 = vector.load %arg10[%c4_169, %c0_170, %c0_171] : memref<6x4x128xf32, #tpu.memory_space<vmem>>, vector<1x4x128xf32>
    %267 = vector.shape_cast %266 : vector<1x4x128xf32> to vector<4x128xf32>
    %268 = vector.shape_cast %265 : vector<4x128xf32> to vector<1x4x128xf32>
    tpu.vector_store %arg10[%c4_169, %c0_170, %c0_171], %268 {strides = array<i32>} : memref<6x4x128xf32, #tpu.memory_space<vmem>>, vector<1x4x128xf32>,
    %269 = vector.broadcast %258 : vector<4x1xf32> to vector<4x128xf32>
    %270 = arith.mulf %269, %261 : vector<4x128xf32>
    %271 = arith.addf %217, %270 : vector<4x128xf32>
    %c5 = arith.constant 5 : index
    %c0_172 = arith.constant 0 : index
    %c0_173 = arith.constant 0 : index
    %272 = vector.load %arg0[%c5, %c0_172, %c0_173] : memref<6x4x64xf32, #tpu.memory_space<vmem>>, vector<1x4x64xf32>
    %273 = vector.shape_cast %272 : vector<1x4x64xf32> to vector<4x64xf32>
    %c5_174 = arith.constant 5 : index
    %c0_175 = arith.constant 0 : index
    %c0_176 = arith.constant 0 : index
    %274 = vector.load %arg2[%c5_174, %c0_175, %c0_176] : memref<6x64x64xf32, #tpu.memory_space<vmem>>, vector<1x64x64xf32>
    %275 = vector.shape_cast %274 : vector<1x64x64xf32> to vector<64x64xf32>
    %cst_177 = arith.constant dense<0.000000e+00> : vector<4x64xf32>
    %276 = tpu.matmul %273, %275, %cst_177 {dimension_numbers = #tpu.dot_dimension_numbers<[1], [0], [0], [1], [0, 0, 1, 1], [], []>} : vector<4x64xf32>, vector<64x64xf32>, vector<4x64xf32> -> vector<4x64xf32>
    %cst_178 = arith.constant dense<0.000000e+00> : vector<64xf32>
    %277 = vector.multi_reduction <add>, %276, %cst_178 [0] : vector<4x64xf32> to vector<64xf32>
    %278 = vector.shape_cast %277 : vector<64xf32> to vector<1x64xf32>
    %cst_179 = arith.constant 4.000000e+00 : f32
    %279 = vector.broadcast %cst_179 : f32 to vector<1x64xf32>
    %280 = arith.divf %278, %279 : vector<1x64xf32>
    %281 = vector.broadcast %280 : vector<1x64xf32> to vector<4x64xf32>
    %282 = arith.subf %276, %281 : vector<4x64xf32>
    %283 = arith.mulf %282, %282 : vector<4x64xf32>
    %cst_180 = arith.constant dense<0.000000e+00> : vector<64xf32>
    %284 = vector.multi_reduction <add>, %283, %cst_180 [0] : vector<4x64xf32> to vector<64xf32>
    %285 = vector.shape_cast %284 : vector<64xf32> to vector<1x64xf32>
    %cst_181 = arith.constant 4.000000e+00 : f32
    %286 = vector.broadcast %cst_181 : f32 to vector<1x64xf32>
    %287 = arith.divf %285, %286 : vector<1x64xf32>
    %288 = vector.broadcast %280 : vector<1x64xf32> to vector<4x64xf32>
    %289 = arith.subf %276, %288 : vector<4x64xf32>
    %cst_182 = arith.constant 9.99999974E-6 : f32
    %290 = vector.broadcast %cst_182 : f32 to vector<1x64xf32>
    %291 = arith.addf %287, %290 : vector<1x64xf32>
    %292 = math.rsqrt %291 : vector<1x64xf32>
    %293 = vector.broadcast %292 : vector<1x64xf32> to vector<4x64xf32>
    %294 = arith.mulf %289, %293 : vector<4x64xf32>
    %c5_183 = arith.constant 5 : index
    %c0_184 = arith.constant 0 : index
    %c0_185 = arith.constant 0 : index
    %295 = vector.load %arg3[%c5_183, %c0_184, %c0_185] : memref<6x1x64xf32, #tpu.memory_space<vmem>>, vector<1x1x64xf32>
    %296 = vector.shape_cast %295 : vector<1x1x64xf32> to vector<1x64xf32>
    %297 = vector.broadcast %296 : vector<1x64xf32> to vector<4x64xf32>
    %298 = arith.mulf %294, %297 : vector<4x64xf32>
    %c5_186 = arith.constant 5 : index
    %c0_187 = arith.constant 0 : index
    %c0_188 = arith.constant 0 : index
    %299 = vector.load %arg4[%c5_186, %c0_187, %c0_188] : memref<6x1x64xf32, #tpu.memory_space<vmem>>, vector<1x1x64xf32>
    %300 = vector.shape_cast %299 : vector<1x1x64xf32> to vector<1x64xf32>
    %301 = vector.broadcast %300 : vector<1x64xf32> to vector<4x64xf32>
    %302 = arith.addf %298, %301 : vector<4x64xf32>
    %c5_189 = arith.constant 5 : index
    %c0_190 = arith.constant 0 : index
    %c0_191 = arith.constant 0 : index
    %303 = vector.load %arg5[%c5_189, %c0_190, %c0_191] : memref<6x1x64xf32, #tpu.memory_space<vmem>>, vector<1x1x64xf32>
    %304 = vector.shape_cast %303 : vector<1x1x64xf32> to vector<1x64xf32>
    %305 = vector.broadcast %304 : vector<1x64xf32> to vector<4x64xf32>
    %306 = arith.mulf %0, %305 : vector<4x64xf32>
    %cst_192 = arith.constant dense<0.000000e+00> : vector<4xf32>
    %307 = vector.multi_reduction <add>, %306, %cst_192 [1] : vector<4x64xf32> to vector<4xf32>
    %308 = vector.shape_cast %307 : vector<4xf32> to vector<4x1xf32>
    %c5_193 = arith.constant 5 : index
    %c0_194 = arith.constant 0 : index
    %c0_195 = arith.constant 0 : index
    %309 = vector.load %arg6[%c5_193, %c0_194, %c0_195] : memref<6x1x1xf32, #tpu.memory_space<vmem>>, vector<1x1x1xf32>
    %310 = vector.shape_cast %309 : vector<1x1x1xf32> to vector<1x1xf32>
    %311 = vector.broadcast %310 : vector<1x1xf32> to vector<4x1xf32>
    %312 = arith.addf %308, %311 : vector<4x1xf32>
    %c5_196 = arith.constant 5 : index
    %c0_197 = arith.constant 0 : index
    %c0_198 = arith.constant 0 : index
    %313 = vector.load %arg7[%c5_196, %c0_197, %c0_198] : memref<6x64x128xf32, #tpu.memory_space<vmem>>, vector<1x64x128xf32>
    %314 = vector.shape_cast %313 : vector<1x64x128xf32> to vector<64x128xf32>
    %cst_199 = arith.constant dense<0.000000e+00> : vector<4x128xf32>
    %315 = tpu.matmul %302, %314, %cst_199 {dimension_numbers = #tpu.dot_dimension_numbers<[1], [0], [0], [1], [0, 0, 1, 1], [], []>} : vector<4x64xf32>, vector<64x128xf32>, vector<4x128xf32> -> vector<4x128xf32>
    %c5_200 = arith.constant 5 : index
    %c0_201 = arith.constant 0 : index
    %c0_202 = arith.constant 0 : index
    %316 = vector.load %arg8[%c5_200, %c0_201, %c0_202] : memref<6x1x128xf32, #tpu.memory_space<vmem>>, vector<1x1x128xf32>
    %317 = vector.shape_cast %316 : vector<1x1x128xf32> to vector<1x128xf32>
    %318 = vector.broadcast %317 : vector<1x128xf32> to vector<4x128xf32>
    %319 = arith.addf %315, %318 : vector<4x128xf32>
    %c5_203 = arith.constant 5 : index
    %c0_204 = arith.constant 0 : index
    %c0_205 = arith.constant 0 : index
    %320 = vector.load %arg10[%c5_203, %c0_204, %c0_205] : memref<6x4x128xf32, #tpu.memory_space<vmem>>, vector<1x4x128xf32>
    %321 = vector.shape_cast %320 : vector<1x4x128xf32> to vector<4x128xf32>
    %322 = vector.shape_cast %319 : vector<4x128xf32> to vector<1x4x128xf32>
    tpu.vector_store %arg10[%c5_203, %c0_204, %c0_205], %322 {strides = array<i32>} : memref<6x4x128xf32, #tpu.memory_space<vmem>>, vector<1x4x128xf32>,
    %323 = vector.broadcast %312 : vector<4x1xf32> to vector<4x128xf32>
    %324 = arith.mulf %323, %315 : vector<4x128xf32>
    %325 = arith.addf %271, %324 : vector<4x128xf32>
    %c0_206 = arith.constant 0 : index
    %c0_207 = arith.constant 0 : index
    %326 = vector.load %arg9[%c0_206, %c0_207] : memref<1x128xf32, #tpu.memory_space<vmem>>, vector<1x128xf32>
    %327 = vector.broadcast %326 : vector<1x128xf32> to vector<4x128xf32>
    %328 = arith.addf %325, %327 : vector<4x128xf32>
    %c0_208 = arith.constant 0 : index
    %c0_209 = arith.constant 0 : index
    %329 = vector.load %arg11[%c0_208, %c0_209] : memref<4x128xf32, #tpu.memory_space<vmem>>, vector<4x128xf32>
    tpu.vector_store %arg11[%c0_208, %c0_209], %328 {strides = array<i32>} : memref<4x128xf32, #tpu.memory_space<vmem>>, vector<4x128xf32>,
    return
  }
}

</mosaic_0001>

<bundles_post_ra>
// kernel: tpu_custom_call.1
= control target key start
LH: loop header
LB: loop body
LE: loop exit
PB: predicated region body
PF: predicated region fallthrough
CT: control target
= control target key end

     0   :  { %17 = vsyncpa [#allocation3], 0  ;;  %s2546_s0 = inlined_call_operand.hbm [shape: f32[6,4,64], index: 0, kind: input, shape index: {}]   ;;  %s2547_s1 = inlined_call_operand.hbm [shape: f32[4,64], index: 1, kind: input, shape index: {}]   ;;  %s2548_s2 = inlined_call_operand.hbm [shape: f32[6,64,64], index: 2, kind: input, shape index: {}]   ;;  %s2549_s3 = inlined_call_operand.vmem [shape: f32[6,1,64], index: 3, kind: input, shape index: {}]   ;;  %s2550_s4 = inlined_call_operand.vmem [shape: f32[6,1,64], index: 4, kind: input, shape index: {}]   ;;  %s2551_s5 = inlined_call_operand.hbm [shape: f32[6,1,64], index: 5, kind: input, shape index: {}]   ;;  %s2552_s6 = inlined_call_operand.vmem [shape: f32[6,1,1], index: 6, kind: input, shape index: {}]   ;;  %s2553_s7 = inlined_call_operand.hbm [shape: f32[6,64,128], index: 7, kind: input, shape index: {}]   ;;  %s2554_s8 = inlined_call_operand.vmem [shape: f32[6,1,128], index: 8, kind: input, shape index: {}]   ;;  %s2555_s9 = inlined_call_operand.vmem [shape: f32[1,128], index: 9, kind: input, shape index: {}]   ;;  %s2556_s10 = inlined_call_operand.hbm [shape: f32[6,4,128], index: 10, kind: output, shape index: {0}]   ;;  %s2557_s11 = inlined_call_operand.hbm [shape: f32[4,128], index: 11, kind: output, shape index: {1}]  }
   0x1   :  { %18 = vsyncpa [#allocation6], 0 }
   0x2   :  { %19 = vsyncpa [#allocation9], 0 }
   0x3   :  { %20 = vsyncpa [#allocation4], 0 }
   0x4   :  { %21 = vsyncpa [#allocation13], 0  ;;  %s2185_s17 = smov [#allocation5]   ;;  %s2186_s19 = smov [#allocation8]  }
   0x5   :  { %s40_s18 = sshll.u32 %s2185_s17, 4  ;;  %s65_s20 = sshll.u32 %s2186_s19, 4  ;;  %s41_s18 = int_to_ptr.vmem [resolvable:$true] %s40_s18  ;;  %s66_s20 = int_to_ptr.vmem [resolvable:$true] %s65_s20 }
   0x6   :  { %s2043_s21 = scalar_lea.vmem %s41_s18, 64  ;;  %p2048_p1 = scmp.lt.s32.totalorder %s41_s18, %s41_s18 }
   0x7   :  { %p2044_p0 = scmp.ne.s32.totalorder %s41_s18, %s2043_s21  ;;  %p2049_p2 = scmp.lt.s32.totalorder %s2043_s21, %s2043_s21 }
   0x9   :  { %p2050_p3 = por %p2049_p2, %p2048_p1 }
   0xb   :  { %p2051_p4 = pnand %p2050_p3, %p2044_p0 }
   0xd   :  { %2054 = shalt.err (!%p2051_p4)
}
   0xe   :  { %43 = dma.hbm_to_vmem [thread:$0]  %s2547_s1, 64, %s41_s18, [#allocation6]  }
   0xf   :  { %s2063_s24 = scalar_lea.vmem %s66_s20, 96  ;;  %p2068_p6 = scmp.lt.s32.totalorder %s66_s20, %s66_s20 }
  0x10   :  { %p2064_p5 = scmp.ne.s32.totalorder %s66_s20, %s2063_s24  ;;  %p2069_p7 = scmp.lt.s32.totalorder %s2063_s24, %s2063_s24 }
  0x12   :  { %p2070_p8 = por %p2069_p7, %p2068_p6 }
  0x14   :  { %p2071_p9 = pnand %p2070_p8, %p2064_p5 }
  0x16   :  { %2074 = shalt.err (!%p2071_p9)
}
  0x17   :  { %s2187_s25 = smov 16   ;;  %s2188_s26 = smov 1  }
  0x18   :  { %71 = dma.hbm_to_vmem [thread:$0]  %s2551_s5, 96, %s66_s20, [#allocation9], %s2187_s25, %s2187_s25, %s2188_s26  }
  0x19   :  { %s2189_s29 = smov [#allocation2]  }
  0x1a   :  { %s27_s30 = sshll.u32 %s2189_s29, 4  ;;  %s28_s30 = int_to_ptr.vmem [resolvable:$true] %s27_s30 }
  0x1b   :  { %s2083_s12 = scalar_lea.vmem %s28_s30, 384  ;;  %p2088_p11 = scmp.lt.s32.totalorder %s28_s30, %s28_s30 }
  0x1c   :  { %p2084_p10 = scmp.ne.s32.totalorder %s28_s30, %s2083_s12  ;;  %p2089_p12 = scmp.lt.s32.totalorder %s2083_s12, %s2083_s12 }
  0x1e   :  { %p2090_p13 = por %p2089_p12, %p2088_p11 }
  0x20   :  { %p2091_p0 = pnand %p2090_p13, %p2084_p10 }
  0x22   :  { %2094 = shalt.err (!%p2091_p0)
}
  0x23   :  { %s2190_s1 = smov 64   ;;  %s2191_s13 = smov 4  }
  0x24   :  { %33 = dma.hbm_to_vmem [thread:$0]  %s2546_s0, 384, %s28_s30, [#allocation3], %s2190_s1, %s2190_s1, %s2191_s13  }
  0x25   :  { %s2192_s5 = smov [#allocation7]  }
  0x26   :  { %s49_s16 = sshll.u32 %s2192_s5, 4  ;;  %s50_s16 = int_to_ptr.vmem [resolvable:$true] %s49_s16 }
  0x27   :  { %s2103_s17 = scalar_lea.vmem %s50_s16, 6144  ;;  %p2108_p2 = scmp.lt.s32.totalorder %s50_s16, %s50_s16 }
  0x28   :  { %p2104_p1 = scmp.ne.s32.totalorder %s50_s16, %s2103_s17  ;;  %p2109_p3 = scmp.lt.s32.totalorder %s2103_s17, %s2103_s17 }
  0x2a   :  { %p2110_p4 = por %p2109_p3, %p2108_p2 }
  0x2c   :  { %p2111_p5 = pnand %p2110_p4, %p2104_p1 }
  0x2e   :  { %2114 = shalt.err (!%p2111_p5)
}
  0x2f   :  { %s2193_s18 = smov 128   ;;  %s2194_s19 = smov 8  }
  0x30   :  { %55 = dma.hbm_to_vmem [thread:$0]  %s2548_s2, 6144, %s50_s16, [#allocation6], %s2193_s18, %s2193_s18, %s2194_s19  }
  0x31   :  { %s2195_s22 = smov [#allocation10]  }
  0x32   :  { %s79_s23 = sshll.u32 %s2195_s22, 4  ;;  %s80_s23 = int_to_ptr.vmem [resolvable:$true] %s79_s23 }
  0x33   :  { %s2123_s0 = scalar_lea.vmem %s80_s23, 6144  ;;  %p2128_p7 = scmp.lt.s32.totalorder %s80_s23, %s80_s23 }
  0x34   :  { %p2124_p6 = scmp.ne.s32.totalorder %s80_s23, %s2123_s0  ;;  %p2129_p8 = scmp.lt.s32.totalorder %s2123_s0, %s2123_s0 }
  0x36   :  { %p2130_p9 = por %p2129_p8, %p2128_p7 }
  0x38   :  { %p2131_p10 = pnand %p2130_p9, %p2124_p6 }
  0x3a   :  { %2134 = shalt.err (!%p2131_p10)
}
  0x3b   :  { %85 = dma.hbm_to_vmem [thread:$0]  %s2553_s7, 6144, %s80_s23, [#allocation9], %s2193_s18, %s2193_s18, %s2194_s19  }
  0x3c   :  { %2175 = dma.done.wait [#allocation3], 384  }
  0x3d   :  { %2176 = vsyncadd [#allocation3], 4294966912 }
  0x3e   :  { %2177 = dma.done.wait [#allocation6], 6208  }
  0x3f   :  { %2178 = vsyncadd [#allocation6], 4294961088 }
  0x40   :  { %2179 = dma.done.wait [#allocation9], 6240  }
  0x41   :  { %2180 = vsyncadd [#allocation9], 4294961056  ;;  %v2196_v0 = vmov 0.0   ;;  %vm2197_vm0 = vmmov 0   ;;  %v114_v1 = vld [vmem:[#allocation7 + $0x38] sm:$0xff]  ;;  %v113_v2 = vld [vmem:[#allocation7 + $0x30] sm:$0xff] }
  0x42   :  { %1777 = vmatprep.subr.mxu0 %v2196_v0  ;;  %1793 = vmatprep.mubr.msk.f32.mxu0 %vm2197_vm0, %v2196_v0  ;;  %v112_v3 = vld [vmem:[#allocation7 + $0x28] sm:$0xff]  ;;  %v111_v4 = vld [vmem:[#allocation7 + $0x20] sm:$0xff]  ;;  %v110_v5 = vld [vmem:[#allocation7 + $0x18] sm:$0xff]  ;;  %vm115_vm1 = vcmask 523264   ;;  %vm189_vm2 = vcmask 519168   ;;  %s2199_s2 = smov [#allocation11]  }
  0x43   :  { %1796 = vmatprep.subr.mxu1 %v2196_v0  ;;  %1812 = vmatprep.mubr.msk.f32.mxu1 %vm2197_vm0, %v2196_v0  ;;  %v109_v6 = vld [vmem:[#allocation7 + $0x10] sm:$0xff]  ;;  %v108_v7 = vld [vmem:[#allocation7 + $0x8] sm:$0xff]  ;;  %v107_v8 = vld [vmem:[#allocation7] sm:$0xff]  ;;  %s1578_s7 = sshll.u32 %s2199_s2, 4  ;;  %s2200_s28 = smov [#allocation12]   ;;  %s1579_s7 = int_to_ptr.vmem [resolvable:$true] %s1578_s7 }
  0x44   :  { %1778 = vmatpush3.msra.mxu0 %v114_v1  ;;  %v106_v9 = vld [vmem:[#allocation2] sm:$0xf]  ;;  %v354_v10 = vld [vmem:[#allocation7 + $0x78] sm:$0xff]  ;;  %v353_v11 = vld [vmem:[#allocation7 + $0x70] sm:$0xff]  ;;  %s1591_s29 = sshll.u32 %s2200_s28, 4  ;;  %s2135_s30 = scalar_lea.vmem %s1579_s7, 384  ;;  %s1592_s29 = int_to_ptr.vmem [resolvable:$true] %s1591_s29 }
  0x45   :  { %1779 = vmatprep.subr.mxu0 %v2196_v0  ;;  %v352_v12 = vld [vmem:[#allocation7 + $0x68] sm:$0xff]  ;;  %v2297_v13 = vld [vmem:[#allocation5] sm:$0xf]  ;;  %v1609_v14 = vld [vmem:[#allocation8] ss:$0 sm:$0xff]  ;;  %p2136_p11 = scmp.ne.s32.totalorder %s1579_s7, %s2135_s30  ;;  %p2140_p12 = scmp.lt.s32.totalorder %s1579_s7, %s1579_s7 }
  0x46   :  { %1780 = vmatpush3.msra.mxu0 %v113_v2  ;;  %v235_v15 = vmul.f32 %v1609_v14, %v2297_v13  ;;  %v351_v16 = vld [vmem:[#allocation7 + $0x60] sm:$0xff]  ;;  %v350_v18 = vld [vmem:[#allocation7 + $0x58] sm:$0xff]  ;;  %v349_v19 = vld [vmem:[#allocation7 + $0x50] sm:$0xff]  ;;  %p2141_p13 = scmp.lt.s32.totalorder %s2135_s30, %s2135_s30 }
  0x47   :  { %1781 = vmatprep.subr.mxu0 %v2196_v0  ;;  %v348_v20 = vld [vmem:[#allocation7 + $0x48] sm:$0xff]  ;;  %v347_v21 = vld [vmem:[#allocation7 + $0x40] sm:$0xff]  ;;  %v598_v23 = vld [vmem:[#allocation7 + $0xb8] sm:$0xff] }
  0x48   :  { %1782 = vmatpush3.msra.mxu0 %v112_v3  ;;  %v236_v17 = vsel %vm189_vm2, %v235_v15, 0.0  ;;  %v345_v22 = vld [vmem:[#allocation2 + $0x4] sm:$0xf]  ;;  %v597_v24 = vld [vmem:[#allocation7 + $0xb0] sm:$0xff]  ;;  %v595_v26 = vld [vmem:[#allocation7 + $0xa0] sm:$0xff]  ;;  %p2142_p0 = por %p2141_p13, %p2140_p12 }
  0x49   :  { %1783 = vmatprep.subr.mxu0 %v2196_v0  ;;  %237 = vadd.xlane.f32.xlu0 %v236_v17  ;;  %v596_v25 = vld [vmem:[#allocation7 + $0xa8] sm:$0xff]  ;;  %v594_v27 = vld [vmem:[#allocation7 + $0x98] sm:$0xff]  ;;  %v593_v28 = vld [vmem:[#allocation7 + $0x90] sm:$0xff] }
  0x4a   :  { %1784 = vmatpush3.msra.mxu0 %v111_v4  ;;  %v592_v29 = vld [vmem:[#allocation7 + $0x88] sm:$0xff]  ;;  %v591_v30 = vld [vmem:[#allocation7 + $0x80] sm:$0xff]  ;;  %v842_v32 = vld [vmem:[#allocation7 + $0xf8] sm:$0xff]  ;;  %p2143_p1 = pnand %p2142_p0, %p2136_p11 }
  0x4b   :  { %1785 = vmatprep.subr.mxu0 %v2196_v0  ;;  %v589_v31 = vld [vmem:[#allocation2 + $0x8] sm:$0xf]  ;;  %v841_v33 = vld [vmem:[#allocation7 + $0xf0] sm:$0xff]  ;;  %v839_v35 = vld [vmem:[#allocation7 + $0xe0] sm:$0xff] }
  0x4c   :  { %1786 = vmatpush3.msra.mxu0 %v110_v5  ;;  %v840_v34 = vld [vmem:[#allocation7 + $0xe8] sm:$0xff]  ;;  %v838_v36 = vld [vmem:[#allocation7 + $0xd8] sm:$0xff]  ;;  %v837_v37 = vld [vmem:[#allocation7 + $0xd0] sm:$0xff] }
  0x4d   :  { %1787 = vmatprep.subr.mxu0 %v2196_v0  ;;  %v836_v38 = vld [vmem:[#allocation7 + $0xc8] sm:$0xff]  ;;  %v835_v39 = vld [vmem:[#allocation7 + $0xc0] sm:$0xff]  ;;  %v833_v40 = vld [vmem:[#allocation2 + $0xc] sm:$0xf] }
  0x4e   :  { %1788 = vmatpush3.msra.mxu0 %v109_v6  ;;  %v1086_v41 = vld [vmem:[#allocation7 + $0x138] sm:$0xff]  ;;  %v1085_v42 = vld [vmem:[#allocation7 + $0x130] sm:$0xff]  ;;  %v1084_v43 = vld [vmem:[#allocation7 + $0x128] sm:$0xff] }
  0x4f   :  { %1789 = vmatprep.subr.mxu0 %v2196_v0  ;;  %v1083_v44 = vld [vmem:[#allocation7 + $0x120] sm:$0xff]  ;;  %v1082_v45 = vld [vmem:[#allocation7 + $0x118] sm:$0xff]  ;;  %v1081_v46 = vld [vmem:[#allocation7 + $0x110] sm:$0xff] }
  0x50   :  { %1790 = vmatpush3.msra.mxu0 %v108_v7  ;;  %v1080_v47 = vld [vmem:[#allocation7 + $0x108] sm:$0xff]  ;;  %v1079_v48 = vld [vmem:[#allocation7 + $0x100] sm:$0xff]  ;;  %v1077_v49 = vld [vmem:[#allocation2 + $0x10] sm:$0xf] }
  0x51   :  { %1791 = vmatprep.subr.mxu0 %v2196_v0  ;;  %v1330_v50 = vld [vmem:[#allocation7 + $0x178] sm:$0xff]  ;;  %v1618_v51 = vld [vmem:[#allocation8 + $0x1] ss:$0 sm:$0xff]  ;;  %v1329_v53 = vld [vmem:[#allocation7 + $0x170] sm:$0xff] }
  0x52   :  { %1792 = vmatpush3.msra.mxu0 %v107_v8  ;;  %v475_v52 = vmul.f32 %v1618_v51, %v2297_v13  ;;  %v1328_v55 = vld [vmem:[#allocation7 + $0x168] sm:$0xff]  ;;  %v1327_v56 = vld [vmem:[#allocation7 + $0x160] sm:$0xff]  ;;  %v1326_v57 = vld [vmem:[#allocation7 + $0x158] sm:$0xff] }
  0x53   :  { %1794 = vmatmul.mubr.msk.f32.vlgmr.msra.gmra.mxu0 %vm115_vm1, %v106_v9  ;;  %1815 = vmatprep.subr.mxu0 %v2196_v0  ;;  %v1325_v58 = vld [vmem:[#allocation7 + $0x150] sm:$0xff]  ;;  %v1324_v59 = vld [vmem:[#allocation7 + $0x148] sm:$0xff]  ;;  %v1323_v60 = vld [vmem:[#allocation7 + $0x140] sm:$0xff] }
  0x54   :  { %1816 = vmatpush3.msra.mxu0 %v354_v10  ;;  %1831 = vmatprep.mubr.msk.f32.mxu0 %vm2197_vm0, %v2196_v0  ;;  %v476_v54 = vsel %vm189_vm2, %v475_v52, 0.0  ;;  %v1321_v61 = vld [vmem:[#allocation2 + $0x14] sm:$0xf]  ;;  %v1629_v62 = vld [vmem:[#allocation8 + $0x2] ss:$0 sm:$0xff]  ;;  %v252_v7 = vld [vmem:[#allocation10 + $0x28] sm:$0xff] }
  0x55   :  { %1817 = vmatprep.subr.mxu0 %v2196_v0  ;;  %477 = vadd.xlane.f32.xlu1 %v476_v54  ;;  %v719_v63 = vmul.f32 %v1629_v62, %v2297_v13  ;;  %v1640_v2 = vld [vmem:[#allocation8 + $0x3] ss:$0 sm:$0xff]  ;;  %v253_v6 = vld [vmem:[#allocation10 + $0x30] sm:$0xff]  ;;  %v1651_v8 = vld [vmem:[#allocation8 + $0x4] ss:$0 sm:$0xff] }
  0x56   :  { %1818 = vmatpush3.msra.mxu0 %v353_v11  ;;  %v963_v3 = vmul.f32 %v1640_v2, %v2297_v13  ;;  %v254_v5 = vld [vmem:[#allocation10 + $0x38] sm:$0xff]  ;;  %v251_v9 = vld [vmem:[#allocation10 + $0x20] sm:$0xff]  ;;  %v1207_v10 = vmul.f32 %v1651_v8, %v2297_v13  ;;  %v249_v15 = vld [vmem:[#allocation10 + $0x10] sm:$0xff] }
  0x57   :  { %1819 = vmatprep.subr.mxu0 %v2196_v0  ;;  %v720_v1 = vsel %vm189_vm2, %v719_v63, 0.0  ;;  %1797 = vmatpush3.msra.mxu1 %v254_v5  ;;  %v250_v11 = vld [vmem:[#allocation10 + $0x18] sm:$0xff]  ;;  %v248_v17 = vld [vmem:[#allocation10 + $0x8] sm:$0xff] }
  0x58   :  { %1820 = vmatpush3.msra.mxu0 %v352_v12  ;;  %v964_v4 = vsel %vm189_vm2, %v963_v3, 0.0  ;;  %1798 = vmatprep.subr.mxu1 %v2196_v0  ;;  %v1208_v12 = vsel %vm189_vm2, %v1207_v10, 0.0  ;;  %v1662_v14 = vld [vmem:[#allocation8 + $0x5] ss:$0 sm:$0xff]  ;;  %v1642_v10 = vld [vmem:[%s2552_s6 + $0x3] ss:$0 sm:$0xff] }
  0x59   :  { %1821 = vmatprep.subr.mxu0 %v2196_v0  ;;  %721 = vadd.xlane.f32.xlu1 %v720_v1 }
  0x5a   :  { %1822 = vmatpush3.msra.mxu0 %v351_v16  ;;  %965 = vadd.xlane.f32.xlu0 %v964_v4  ;;  %v1451_v16 = vmul.f32 %v1662_v14, %v2297_v13 }
  0x5b   :  { %1823 = vmatprep.subr.mxu0 %v2196_v0  ;;  %1799 = vmatpush3.msra.mxu1 %v253_v6 }
  0x5c   :  { %1824 = vmatpush3.msra.mxu0 %v350_v18  ;;  %1800 = vmatprep.subr.mxu1 %v2196_v0  ;;  %v1452_v18 = vsel %vm189_vm2, %v1451_v16, 0.0 }
  0x5d   :  { %1825 = vmatprep.subr.mxu0 %v2196_v0  ;;  %1801 = vmatpush3.msra.mxu1 %v252_v7 }
  0x5e   :  { %1826 = vmatpush3.msra.mxu0 %v349_v19  ;;  %1802 = vmatprep.subr.mxu1 %v2196_v0  ;;  %v247_v19 = vld [vmem:[#allocation10] sm:$0xff] }
  0x5f   :  { %1827 = vmatprep.subr.mxu0 %v2196_v0  ;;  %1803 = vmatpush3.msra.mxu1 %v251_v9 }
  0x60   :  { %1828 = vmatpush3.msra.mxu0 %v348_v20  ;;  %1804 = vmatprep.subr.mxu1 %v2196_v0  ;;  %v1610_v20 = vld [vmem:[%s2552_s6] ss:$0 sm:$0xff] }
  0x61   :  { %1829 = vmatprep.subr.mxu0 %v2196_v0  ;;  %1805 = vmatpush3.msra.mxu1 %v250_v11 }
  0x62   :  { %1830 = vmatpush3.msra.mxu0 %v347_v21  ;;  %1209 = vadd.xlane.f32.xlu1 %v1208_v12 }
  0x63   :  { %1832 = vmatmul.mubr.msk.f32.vlgmr.msra.gmra.mxu0 %vm115_vm1, %v345_v22  ;;  %1853 = vmatprep.subr.mxu0 %v2196_v0  ;;  %v2198_v22 = vmov 0  }
  0x64   :  { %1854 = vmatpush3.msra.mxu0 %v598_v23  ;;  %1869 = vmatprep.mubr.msk.f32.mxu0 %vm2197_vm0, %v2196_v0 }
  0x65   :  { %1855 = vmatprep.subr.mxu0 %v2196_v0  ;;  %1806 = vmatprep.subr.mxu1 %v2196_v0 }
  0x66   :  { %1856 = vmatpush3.msra.mxu0 %v597_v24  ;;  %1807 = vmatpush3.msra.mxu1 %v249_v15 }
  0x67   :  { %1857 = vmatprep.subr.mxu0 %v2196_v0  ;;  %1808 = vmatprep.subr.mxu1 %v2196_v0 }
  0x68   :  { %1858 = vmatpush3.msra.mxu0 %v596_v25  ;;  %1809 = vmatpush3.msra.mxu1 %v248_v17 }
  0x69   :  { %1859 = vmatprep.subr.mxu0 %v2196_v0  ;;  %1453 = vadd.xlane.f32.xlu1 %v1452_v18 }
  0x6a   :  { %1860 = vmatpush3.msra.mxu0 %v595_v26  ;;  %1810 = vmatprep.subr.mxu1 %v2196_v0 }
  0x6b   :  { %1861 = vmatprep.subr.mxu0 %v2196_v0  ;;  %1811 = vmatpush3.msra.mxu1 %v247_v19 }
  0x6c   :  { %1862 = vmatpush3.msra.mxu0 %v594_v27  ;;  %1834 = vmatprep.subr.mxu1 %v2196_v0 }
  0x6d   :  { %1863 = vmatprep.subr.mxu0 %v2196_v0  ;;  %2021 = vset.pattern.permute.xlu0 %v2198_v22 }
  0x6e   :  { %1864 = vmatpush3.msra.mxu0 %v593_v28  ;;  %2022 = vset.pattern.permute.xlu1 %v2198_v22 }
  0x6f   :  { %1865 = vmatprep.subr.mxu0 %v2196_v0 }
  0x70   :  { %1866 = vmatpush3.msra.mxu0 %v592_v29 }
  0x71   :  { %1867 = vmatprep.subr.mxu0 %v2196_v0 }
  0x72   :  { %1868 = vmatpush3.msra.mxu0 %v591_v30  ;;  %v1620_v30 = vld [vmem:[%s2552_s6 + $0x1] ss:$0 sm:$0xff] }
  0x73   :  { %1870 = vmatmul.mubr.msk.f32.vlgmr.msra.gmra.mxu0 %vm115_vm1, %v589_v31  ;;  %1891 = vmatprep.subr.mxu0 %v2196_v0 }
  0x74   :  { %1892 = vmatpush3.msra.mxu0 %v842_v32  ;;  %1907 = vmatprep.mubr.msk.f32.mxu0 %vm2197_vm0, %v2196_v0 }
  0x75   :  { %1893 = vmatprep.subr.mxu0 %v2196_v0 }
  0x76   :  { %1894 = vmatpush3.msra.mxu0 %v841_v33 }
  0x77   :  { %1895 = vmatprep.subr.mxu0 %v2196_v0 }
  0x78   :  { %1896 = vmatpush3.msra.mxu0 %v840_v34 }
  0x79   :  { %1897 = vmatprep.subr.mxu0 %v2196_v0 }
  0x7a   :  { %1898 = vmatpush3.msra.mxu0 %v839_v35 }
  0x7b   :  { %1899 = vmatprep.subr.mxu0 %v2196_v0 }
  0x7c   :  { %1900 = vmatpush3.msra.mxu0 %v838_v36 }
  0x7d   :  { %1901 = vmatprep.subr.mxu0 %v2196_v0 }
  0x7e   :  { %1902 = vmatpush3.msra.mxu0 %v837_v37 }
  0x7f   :  { %1903 = vmatprep.subr.mxu0 %v2196_v0 }
  0x80   :  { %1904 = vmatpush3.msra.mxu0 %v836_v38 }
  0x81   :  { %1905 = vmatprep.subr.mxu0 %v2196_v0 }
  0x82   :  { %1906 = vmatpush3.msra.mxu0 %v835_v39 }
  0x83   :  { %1908 = vmatmul.mubr.msk.f32.vlgmr.msra.gmra.mxu0 %vm115_vm1, %v833_v40  ;;  %1929 = vmatprep.subr.mxu0 %v2196_v0 }
  0x84   :  { %1930 = vmatpush3.msra.mxu0 %v1086_v41  ;;  %1945 = vmatprep.mubr.msk.f32.mxu0 %vm2197_vm0, %v2196_v0 }
  0x85   :  { %1931 = vmatprep.subr.mxu0 %v2196_v0 }
  0x86   :  { %1932 = vmatpush3.msra.mxu0 %v1085_v42 }
  0x87   :  { %1933 = vmatprep.subr.mxu0 %v2196_v0 }
  0x88   :  { %1934 = vmatpush3.msra.mxu0 %v1084_v43 }
  0x89   :  { %1935 = vmatprep.subr.mxu0 %v2196_v0 }
  0x8a   :  { %1936 = vmatpush3.msra.mxu0 %v1083_v44 }
  0x8b   :  { %1937 = vmatprep.subr.mxu0 %v2196_v0 }
  0x8c   :  { %1938 = vmatpush3.msra.mxu0 %v1082_v45 }
  0x8d   :  { %1939 = vmatprep.subr.mxu0 %v2196_v0 }
  0x8e   :  { %1940 = vmatpush3.msra.mxu0 %v1081_v46 }
  0x8f   :  { %1941 = vmatprep.subr.mxu0 %v2196_v0 }
  0x90   :  { %1942 = vmatpush3.msra.mxu0 %v1080_v47 }
  0x91   :  { %1943 = vmatprep.subr.mxu0 %v2196_v0 }
  0x92   :  { %1944 = vmatpush3.msra.mxu0 %v1079_v48 }
  0x93   :  { %1946 = vmatmul.mubr.msk.f32.vlgmr.msra.gmra.mxu0 %vm115_vm1, %v1077_v49  ;;  %1967 = vmatprep.subr.mxu0 %v2196_v0  ;;  %v1631_v49 = vld [vmem:[%s2552_s6 + $0x2] ss:$0 sm:$0xff] }
  0x94   :  { %1968 = vmatpush3.msra.mxu0 %v1330_v50  ;;  %1983 = vmatprep.mubr.msk.f32.mxu0 %vm2197_vm0, %v2196_v0 }
  0x95   :  { %1969 = vmatprep.subr.mxu0 %v2196_v0 }
  0x96   :  { %1970 = vmatpush3.msra.mxu0 %v1329_v53 }
  0x97   :  { %1971 = vmatprep.subr.mxu0 %v2196_v0 }
  0x98   :  { %1972 = vmatpush3.msra.mxu0 %v1328_v55 }
  0x99   :  { %1973 = vmatprep.subr.mxu0 %v2196_v0 }
  0x9a   :  { %1974 = vmatpush3.msra.mxu0 %v1327_v56 }
  0x9b   :  { %1975 = vmatprep.subr.mxu0 %v2196_v0 }
  0x9c   :  { %1976 = vmatpush3.msra.mxu0 %v1326_v57 }
  0x9d   :  { %1977 = vmatprep.subr.mxu0 %v2196_v0 }
  0x9e   :  { %1978 = vmatpush3.msra.mxu0 %v1325_v58 }
  0x9f   :  { %1979 = vmatprep.subr.mxu0 %v2196_v0 }
  0xa0   :  { %1980 = vmatpush3.msra.mxu0 %v1324_v59 }
  0xa1   :  { %1981 = vmatprep.subr.mxu0 %v2196_v0 }
  0xa2   :  { %1982 = vmatpush3.msra.mxu0 %v1323_v60 }
  0xa3   :  { %1984 = vmatmul.mubr.msk.f32.vlgmr.msra.gmra.mxu0 %vm115_vm1, %v1321_v61 }
  0xd2   :  { %v238_v21 = vpop.xlane.xlu0 %237 }
  0xd3   :  { %v246_v13 = vadd.f32 %v1610_v20, %v238_v21 }
  0xd5   :  { %339 = vperm.xlu0 %2021, %v246_v13  }
  0xde   :  { %v478_v32 = vpop.xlane.xlu1 %477 }
  0xdf   :  { %v487_v34 = vadd.f32 %v1620_v30, %v478_v32  ;;  %v1608_v32 = vld [vmem:[%s2550_s4] ss:$0 sm:$0xff] }
  0xe1   :  { %583 = vperm.xlu1 %2022, %v487_v34  }
  0xe2   :  { %v722_v52 = vpop.xlane.xlu1 %721 }
  0xe3   :  { %v731_v54 = vadd.f32 %v1631_v49, %v722_v52  ;;  %v966_v14 = vpop.xlane.xlu0 %965 }
  0xe4   :  { %v975_v16 = vadd.f32 %v1642_v10, %v966_v14  ;;  %v489_v14 = vld [vmem:[#allocation10 + $0x40] sm:$0xff] }
  0xe5   :  { %827 = vperm.xlu1 %2022, %v731_v54   ;;  %v492_v54 = vld [vmem:[#allocation10 + $0x58] sm:$0xff] }
  0xe6   :  { %1071 = vperm.xlu0 %2021, %v975_v16  }
 0x113   :  { %v185_v23 = vpop.f32.mrf.mxu0 }
 0x114   :  { %v190_v24 = vsel %vm189_vm2, %v185_v23, 0.0 }
 0x115   :  { %v191_v25 = vrot.slane %v190_v24, 4  ;;  %v1795_v26 = vpop.f32.mrf.mxu0 }
 0x117   :  { %v192_v27 = vadd.f32 %v191_v25, %v190_v24  ;;  %v1607_v24 = vld [vmem:[%s2549_s3] ss:$0 sm:$0xff] }
 0x119   :  { %v193_v28 = vrot.slane %v192_v27, 2 }
 0x11b   :  { %v194_v29 = vadd.f32 %v193_v28, %v192_v27 }
 0x11d   :  { %v195_v31 = vrot.slane %v194_v29, 1 }
 0x11f   :  { %v196_v33 = vadd.f32 %v195_v31, %v194_v29 }
 0x121   :  { %v198_v35 = vmul.f32 0.25, %v196_v33 }
 0x123   :  { %v199_v36 = vsub.f32 %v185_v23, %v198_v35  ;;  %v424_v37 = vpop.f32.mrf.mxu0 }
 0x124   :  { %v428_v38 = vsel %vm189_vm2, %v424_v37, 0.0 }
 0x125   :  { %v200_v39 = vmul.f32 %v199_v36, %v199_v36  ;;  %v429_v40 = vrot.slane %v428_v38, 4  ;;  %v1833_v41 = vpop.f32.mrf.mxu0 }
 0x127   :  { %v201_v42 = vsel %vm189_vm2, %v200_v39, 0.0  ;;  %v430_v43 = vadd.f32 %v429_v40, %v428_v38  ;;  %v496_v39 = vld [vmem:[#allocation10 + $0x78] sm:$0xff] }
 0x128   :  { %v202_v44 = vrot.slane %v201_v42, 4 }
 0x129   :  { %v431_v45 = vrot.slane %v430_v43, 2 }
 0x12a   :  { %v203_v46 = vadd.f32 %v202_v44, %v201_v42  ;;  %v1653_v42 = vld [vmem:[%s2552_s6 + $0x4] ss:$0 sm:$0xff] }
 0x12b   :  { %v432_v47 = vadd.f32 %v431_v45, %v430_v43  ;;  %v494_v45 = vld [vmem:[#allocation10 + $0x68] sm:$0xff] }
 0x12c   :  { %v204_v48 = vrot.slane %v203_v46, 2 }
 0x12d   :  { %v433_v50 = vrot.slane %v432_v47, 1 }
 0x12e   :  { %v205_v51 = vadd.f32 %v204_v48, %v203_v46  ;;  %v1210_v46 = vpop.xlane.xlu1 %1209 }
 0x12f   :  { %v434_v53 = vadd.f32 %v433_v50, %v432_v47  ;;  %v1219_v48 = vadd.f32 %v1653_v42, %v1210_v46  ;;  %v493_v50 = vld [vmem:[#allocation10 + $0x60] sm:$0xff]  ;;  %v734_v42 = vld [vmem:[#allocation10 + $0x88] sm:$0xff] }
 0x130   :  { %v206_v55 = vrot.slane %v205_v51, 1 }
 0x131   :  { %v435_v56 = vmul.f32 0.25, %v434_v53  ;;  %1315 = vperm.xlu1 %2022, %v1219_v48   ;;  %v733_v48 = vld [vmem:[#allocation10 + $0x80] sm:$0xff] }
 0x132   :  { %v207_v57 = vadd.f32 %v206_v55, %v205_v51  ;;  %v1664_v51 = vld [vmem:[%s2552_s6 + $0x5] ss:$0 sm:$0xff]  ;;  %v1454_v55 = vpop.xlane.xlu1 %1453 }
 0x133   :  { %v2382_v58 = vsub.f32 %v424_v37, %v435_v56  ;;  %v668_v59 = vpop.f32.mrf.mxu0 }
 0x134   :  { %v208_v60 = vmul.f32 0.25, %v207_v57  ;;  %v672_v61 = vsel %vm189_vm2, %v668_v59, 0.0 }
 0x135   :  { %v437_v62 = vmul.f32 %v2382_v58, %v2382_v58  ;;  %v673_v63 = vrot.slane %v672_v61, 4  ;;  %v1871_v1 = vpop.f32.mrf.mxu0 }
 0x136   :  { %v209_v2 = vadd.f32 1e-05, %v208_v60  ;;  %v1615_v1 = vld [vmem:[%s2549_s3 + $0x1] ss:$0 sm:$0xff] }
 0x137   :  { %v438_v3 = vsel %vm189_vm2, %v437_v62, 0.0  ;;  %v674_v4 = vadd.f32 %v673_v63, %v672_v61  ;;  %v491_v62 = vld [vmem:[#allocation10 + $0x50] sm:$0xff] }
 0x138   :  { %2023 = vrsqrt.f32 %v209_v2  ;;  %v439_v5 = vrot.slane %v438_v3, 4 }
 0x139   :  { %v675_v6 = vrot.slane %v674_v4, 2 }
 0x13a   :  { %v440_v7 = vadd.f32 %v439_v5, %v438_v3 }
 0x13b   :  { %v676_v8 = vadd.f32 %v675_v6, %v674_v4 }
 0x13c   :  { %v441_v9 = vrot.slane %v440_v7, 2 }
 0x13d   :  { %v677_v11 = vrot.slane %v676_v8, 1 }
 0x13e   :  { %v442_v12 = vadd.f32 %v441_v9, %v440_v7  ;;  %v490_v7 = vld [vmem:[#allocation10 + $0x48] sm:$0xff] }
 0x13f   :  { %v678_v15 = vadd.f32 %v677_v11, %v676_v8  ;;  %v1617_v8 = vld [vmem:[%s2550_s4 + $0x1] ss:$0 sm:$0xff] }
 0x140   :  { %v443_v17 = vrot.slane %v442_v12, 1 }
 0x141   :  { %v679_v18 = vmul.f32 0.25, %v678_v15 }
 0x142   :  { %v444_v19 = vadd.f32 %v443_v17, %v442_v12  ;;  %v740_v17 = vld [vmem:[#allocation10 + $0xb8] sm:$0xff] }
 0x143   :  { %v2391_v20 = vsub.f32 %v668_v59, %v679_v18  ;;  %v912_v21 = vpop.f32.mrf.mxu0  ;;  %v1463_v59 = vadd.f32 %v1664_v51, %v1454_v55  ;;  %v984_v51 = vld [vmem:[#allocation10 + $0xf8] sm:$0xff] }
 0x144   :  { %v445_v13 = vmul.f32 0.25, %v444_v19  ;;  %v916_v22 = vsel %vm189_vm2, %v912_v21, 0.0 }
 0x145   :  { %v2024_v23 = vpop.eup %2023  ;;  %v681_v25 = vmul.f32 %v2391_v20, %v2391_v20  ;;  %v917_v26 = vrot.slane %v916_v22, 4  ;;  %v1909_v27 = vpop.f32.mrf.mxu0  ;;  %1559 = vperm.xlu1 %2022, %v1463_v59   ;;  %v982_v59 = vld [vmem:[#allocation10 + $0xe8] sm:$0xff] }
 0x146   :  { %v211_v28 = vmul.f32 %v2024_v23, %v199_v36  ;;  %v446_v29 = vadd.f32 1e-05, %v445_v13  ;;  %v495_v36 = vld [vmem:[#allocation10 + $0x70] sm:$0xff]  ;;  %v738_v23 = vld [vmem:[#allocation10 + $0xa8] sm:$0xff] }
 0x147   :  { %v682_v30 = vsel %vm189_vm2, %v681_v25, 0.0  ;;  %v918_v31 = vadd.f32 %v917_v26, %v916_v22  ;;  %v737_v26 = vld [vmem:[#allocation10 + $0xa0] sm:$0xff] }
 0x148   :  { %v219_v33 = vmul.f32 %v1607_v24, %v211_v28  ;;  %2025 = vrsqrt.f32 %v446_v29  ;;  %v683_v34 = vrot.slane %v682_v30, 4  ;;  %v736_v29 = vld [vmem:[#allocation10 + $0x98] sm:$0xff] }
 0x149   :  { %v919_v35 = vrot.slane %v918_v31, 2 }
 0x14a   :  { %v684_v37 = vadd.f32 %v683_v34, %v682_v30  ;;  %v227_v38 = vadd.f32 %v1608_v32, %v219_v33  ;;  %v735_v34 = vld [vmem:[#allocation10 + $0x90] sm:$0xff] }
 0x14b   :  { %v920_v40 = vadd.f32 %v919_v35, %v918_v31 }
 0x14c   :  { %v685_v41 = vrot.slane %v684_v37, 2  ;;  %1813 = vmatmul.mubr.msk.f32.vlgmr.msra.gmra.mxu1 %vm115_vm1, %v227_v38 }
 0x14d   :  { %v921_v43 = vrot.slane %v920_v40, 1  ;;  %1835 = vmatpush3.msra.mxu1 %v496_v39  ;;  %1850 = vmatprep.mubr.msk.f32.mxu1 %vm2197_vm0, %v2196_v0 }
 0x14e   :  { %v686_v44 = vadd.f32 %v685_v41, %v684_v37  ;;  %1836 = vmatprep.subr.mxu1 %v2196_v0  ;;  %v1626_v37 = vld [vmem:[%s2549_s3 + $0x2] ss:$0 sm:$0xff] }
 0x14f   :  { %v922_v47 = vadd.f32 %v921_v43, %v920_v40  ;;  %1837 = vmatpush3.msra.mxu1 %v495_v36  ;;  %v1628_v43 = vld [vmem:[%s2550_s4 + $0x2] ss:$0 sm:$0xff] }
 0x150   :  { %v687_v49 = vrot.slane %v686_v44, 1  ;;  %1838 = vmatprep.subr.mxu1 %v2196_v0 }
 0x151   :  { %v923_v52 = vmul.f32 0.25, %v922_v47  ;;  %1839 = vmatpush3.msra.mxu1 %v494_v45 }
 0x152   :  { %v688_v53 = vadd.f32 %v687_v49, %v686_v44  ;;  %1840 = vmatprep.subr.mxu1 %v2196_v0 }
 0x153   :  { %v2415_v56 = vsub.f32 %v912_v21, %v923_v52  ;;  %1841 = vmatpush3.msra.mxu1 %v493_v50  ;;  %v1156_v57 = vpop.f32.mrf.mxu0  ;;  %v739_v21 = vld [vmem:[#allocation10 + $0xb0] sm:$0xff] }
 0x154   :  { %v689_v60 = vmul.f32 0.25, %v688_v53  ;;  %v1160_v61 = vsel %vm189_vm2, %v1156_v57, 0.0  ;;  %1842 = vmatprep.subr.mxu1 %v2196_v0 }
 0x155   :  { %v2026_v63 = vpop.eup %2025  ;;  %v925_v2 = vmul.f32 %v2415_v56, %v2415_v56  ;;  %v1161_v3 = vrot.slane %v1160_v61, 4  ;;  %1843 = vmatpush3.msra.mxu1 %v492_v54  ;;  %v1947_v4 = vpop.f32.mrf.mxu0  ;;  %v983_v54 = vld [vmem:[#allocation10 + $0xf0] sm:$0xff] }
 0x156   :  { %v448_v5 = vmul.f32 %v2026_v63, %v2382_v58  ;;  %v690_v6 = vadd.f32 1e-05, %v689_v60  ;;  %1844 = vmatprep.subr.mxu1 %v2196_v0 }
 0x157   :  { %v926_v9 = vsel %vm189_vm2, %v925_v2, 0.0  ;;  %v1162_v10 = vadd.f32 %v1161_v3, %v1160_v61  ;;  %1845 = vmatpush3.msra.mxu1 %v491_v62  ;;  %v981_v62 = vld [vmem:[#allocation10 + $0xe0] sm:$0xff]  ;;  %v980_v2 = vld [vmem:[#allocation10 + $0xd8] sm:$0xff] }
 0x158   :  { %v457_v11 = vmul.f32 %v1615_v1, %v448_v5  ;;  %2027 = vrsqrt.f32 %v690_v6  ;;  %v927_v12 = vrot.slane %v926_v9, 4  ;;  %1846 = vmatprep.subr.mxu1 %v2196_v0  ;;  %v979_v5 = vld [vmem:[#allocation10 + $0xd0] sm:$0xff] }
 0x159   :  { %v1163_v15 = vrot.slane %v1162_v10, 2  ;;  %1847 = vmatpush3.msra.mxu1 %v490_v7  ;;  %v1637_v7 = vld [vmem:[%s2549_s3 + $0x3] ss:$0 sm:$0xff] }
 0x15a   :  { %v466_v58 = vadd.f32 %v1617_v8, %v457_v11  ;;  %v928_v16 = vadd.f32 %v927_v12, %v926_v9  ;;  %1848 = vmatprep.subr.mxu1 %v2196_v0  ;;  %v978_v11 = vld [vmem:[#allocation10 + $0xc8] sm:$0xff]  ;;  %v1639_v12 = vld [vmem:[%s2550_s4 + $0x3] ss:$0 sm:$0xff] }
 0x15b   :  { %v1164_v18 = vadd.f32 %v1163_v15, %v1162_v10  ;;  %1849 = vmatpush3.msra.mxu1 %v489_v14 }
 0x15c   :  { %v929_v19 = vrot.slane %v928_v16, 2  ;;  %1851 = vmatmul.mubr.msk.f32.vlgmr.msra.gmra.mxu1 %vm115_vm1, %v466_v58  ;;  %1872 = vmatprep.subr.mxu1 %v2196_v0 }
 0x15d   :  { %v1165_v13 = vrot.slane %v1164_v18, 1  ;;  %1873 = vmatpush3.msra.mxu1 %v740_v17  ;;  %1888 = vmatprep.mubr.msk.f32.mxu1 %vm2197_vm0, %v2196_v0 }
 0x15e   :  { %v930_v22 = vadd.f32 %v929_v19, %v928_v16  ;;  %1874 = vmatprep.subr.mxu1 %v2196_v0  ;;  %v977_v16 = vld [vmem:[#allocation10 + $0xc0] sm:$0xff] }
 0x15f   :  { %v1166_v24 = vadd.f32 %v1165_v13, %v1164_v18  ;;  %1875 = vmatpush3.msra.mxu1 %v739_v21  ;;  %v1228_v18 = vld [vmem:[#allocation10 + $0x138] sm:$0xff]  ;;  %v1227_v21 = vld [vmem:[#allocation10 + $0x130] sm:$0xff] }
 0x160   :  { %v931_v25 = vrot.slane %v930_v22, 1  ;;  %1876 = vmatprep.subr.mxu1 %v2196_v0 }
 0x161   :  { %v1167_v27 = vmul.f32 0.25, %v1166_v24  ;;  %1877 = vmatpush3.msra.mxu1 %v738_v23  ;;  %v1225_v24 = vld [vmem:[#allocation10 + $0x120] sm:$0xff] }
 0x162   :  { %v932_v28 = vadd.f32 %v931_v25, %v930_v22  ;;  %1878 = vmatprep.subr.mxu1 %v2196_v0  ;;  %v1226_v22 = vld [vmem:[#allocation10 + $0x128] sm:$0xff] }
 0x163   :  { %v2439_v30 = vsub.f32 %v1156_v57, %v1167_v27  ;;  %1879 = vmatpush3.msra.mxu1 %v737_v26  ;;  %v1400_v31 = vpop.f32.mrf.mxu0  ;;  %v1224_v26 = vld [vmem:[#allocation10 + $0x118] sm:$0xff] }
 0x164   :  { %v933_v32 = vmul.f32 0.25, %v932_v28  ;;  %v1404_v33 = vsel %vm189_vm2, %v1400_v31, 0.0  ;;  %1880 = vmatprep.subr.mxu1 %v2196_v0  ;;  %v1223_v28 = vld [vmem:[#allocation10 + $0x110] sm:$0xff] }
 0x165   :  { %v2028_v35 = vpop.eup %2027  ;;  %v1169_v38 = vmul.f32 %v2439_v30, %v2439_v30  ;;  %v1405_v39 = vrot.slane %v1404_v33, 4  ;;  %1881 = vmatpush3.msra.mxu1 %v736_v29  ;;  %v1985_v40 = vpop.f32.mrf.mxu0 }
 0x166   :  { %v692_v41 = vmul.f32 %v2028_v35, %v2391_v20  ;;  %v934_v36 = vadd.f32 1e-05, %v933_v32  ;;  %1882 = vmatprep.subr.mxu1 %v2196_v0  ;;  %v1650_v35 = vld [vmem:[%s2550_s4 + $0x4] ss:$0 sm:$0xff]  ;;  %v1472_v40 = vld [vmem:[#allocation10 + $0x178] sm:$0xff] }
 0x167   :  { %v1170_v44 = vsel %vm189_vm2, %v1169_v38, 0.0  ;;  %v1406_v45 = vadd.f32 %v1405_v39, %v1404_v33  ;;  %1883 = vmatpush3.msra.mxu1 %v735_v34  ;;  %v1222_v34 = vld [vmem:[#allocation10 + $0x108] sm:$0xff]  ;;  %v1221_v38 = vld [vmem:[#allocation10 + $0x100] sm:$0xff] }
 0x168   :  { %v701_v46 = vmul.f32 %v1626_v37, %v692_v41  ;;  %2029 = vrsqrt.f32 %v934_v36  ;;  %v1171_v47 = vrot.slane %v1170_v44, 4  ;;  %1884 = vmatprep.subr.mxu1 %v2196_v0  ;;  %v1470_v41 = vld [vmem:[#allocation10 + $0x168] sm:$0xff]  ;;  %v1469_v36 = vld [vmem:[#allocation10 + $0x160] sm:$0xff] }
 0x169   :  { %v1407_v49 = vrot.slane %v1406_v45, 2  ;;  %1885 = vmatpush3.msra.mxu1 %v734_v42  ;;  %v1468_v42 = vld [vmem:[#allocation10 + $0x158] sm:$0xff] }
 0x16a   :  { %v710_v20 = vadd.f32 %v1628_v43, %v701_v46  ;;  %v1172_v50 = vadd.f32 %v1171_v47, %v1170_v44  ;;  %1886 = vmatprep.subr.mxu1 %v2196_v0  ;;  %v1467_v43 = vld [vmem:[#allocation10 + $0x150] sm:$0xff]  ;;  %v1466_v47 = vld [vmem:[#allocation10 + $0x148] sm:$0xff] }
 0x16b   :  { %v1408_v52 = vadd.f32 %v1407_v49, %v1406_v45  ;;  %1887 = vmatpush3.msra.mxu1 %v733_v48  ;;  %v1659_v45 = vld [vmem:[%s2549_s3 + $0x5] ss:$0 sm:$0xff] }
 0x16c   :  { %v1173_v53 = vrot.slane %v1172_v50, 2  ;;  %1889 = vmatmul.mubr.msk.f32.vlgmr.msra.gmra.mxu1 %vm115_vm1, %v710_v20  ;;  %1910 = vmatprep.subr.mxu1 %v2196_v0  ;;  %v1661_v48 = vld [vmem:[%s2550_s4 + $0x5] ss:$0 sm:$0xff] }
 0x16d   :  { %v1409_v55 = vrot.slane %v1408_v52, 1  ;;  %1911 = vmatpush3.msra.mxu1 %v984_v51  ;;  %1926 = vmatprep.mubr.msk.f32.mxu1 %vm2197_vm0, %v2196_v0  ;;  %v1465_v20 = vld [vmem:[#allocation10 + $0x140] sm:$0xff]  ;;  %v1612_v51 = vld [vmem:[%s2554_s8] ss:$0 sm:$0xff] }
 0x16e   :  { %v1174_v57 = vadd.f32 %v1173_v53, %v1172_v50  ;;  %1912 = vmatprep.subr.mxu1 %v2196_v0 }
 0x16f   :  { %v1410_v60 = vadd.f32 %v1409_v55, %v1408_v52  ;;  %1913 = vmatpush3.msra.mxu1 %v983_v54  ;;  %v1623_v55 = vld [vmem:[%s2554_s8 + $0x1] ss:$0 sm:$0xff] }
 0x170   :  { %v1175_v61 = vrot.slane %v1174_v57, 1  ;;  %1914 = vmatprep.subr.mxu1 %v2196_v0 }
 0x171   :  { %v1411_v63 = vmul.f32 0.25, %v1410_v60  ;;  %1915 = vmatpush3.msra.mxu1 %v982_v59 }
 0x172   :  { %v1176_v1 = vadd.f32 %v1175_v61, %v1174_v57  ;;  %1916 = vmatprep.subr.mxu1 %v2196_v0 }
 0x173   :  { %v2463_v3 = vsub.f32 %v1400_v31, %v1411_v63  ;;  %1917 = vmatpush3.msra.mxu1 %v981_v62  ;;  %v1648_v31 = vld [vmem:[%s2549_s3 + $0x4] ss:$0 sm:$0xff] }
 0x174   :  { %v1177_v4 = vmul.f32 0.25, %v1176_v1  ;;  %1918 = vmatprep.subr.mxu1 %v2196_v0  ;;  %v1645_v1 = vld [vmem:[%s2554_s8 + $0x3] ss:$0 sm:$0xff] }
 0x175   :  { %v2030_v6 = vpop.eup %2029  ;;  %v1413_v8 = vmul.f32 %v2463_v3, %v2463_v3  ;;  %1919 = vmatpush3.msra.mxu1 %v980_v2 }
 0x176   :  { %v936_v9 = vmul.f32 %v2030_v6, %v2415_v56  ;;  %v1178_v10 = vadd.f32 1e-05, %v1177_v4  ;;  %1920 = vmatprep.subr.mxu1 %v2196_v0 }
 0x177   :  { %v1414_v14 = vsel %vm189_vm2, %v1413_v8, 0.0  ;;  %1921 = vmatpush3.msra.mxu1 %v979_v5  ;;  %v1656_v5 = vld [vmem:[%s2554_s8 + $0x4] ss:$0 sm:$0xff]  ;;  %v584_v8 = vpop.permute.xlu1 %583 }
 0x178   :  { %v945_v15 = vmul.f32 %v1637_v7, %v936_v9  ;;  %2031 = vrsqrt.f32 %v1178_v10  ;;  %v1415_v58 = vrot.slane %v1414_v14, 4  ;;  %1922 = vmatprep.subr.mxu1 %v2196_v0  ;;  %v340_v10 = vpop.permute.xlu0 %339 }
 0x179   :  { %1923 = vmatpush3.msra.mxu1 %v978_v11 }
 0x17a   :  { %v954_v17 = vadd.f32 %v1639_v12, %v945_v15  ;;  %v1416_v56 = vadd.f32 %v1415_v58, %v1414_v14  ;;  %1924 = vmatprep.subr.mxu1 %v2196_v0 }
 0x17b   :  { %1925 = vmatpush3.msra.mxu1 %v977_v16  ;;  %v828_v11 = vpop.permute.xlu1 %827 }
 0x17c   :  { %v1417_v19 = vrot.slane %v1416_v56, 2  ;;  %1927 = vmatmul.mubr.msk.f32.vlgmr.msra.gmra.mxu1 %vm115_vm1, %v954_v17  ;;  %1948 = vmatprep.subr.mxu1 %v2196_v0  ;;  %v1072_v14 = vpop.permute.xlu0 %1071 }
 0x17d   :  { %1949 = vmatpush3.msra.mxu1 %v1228_v18  ;;  %1964 = vmatprep.mubr.msk.f32.mxu1 %vm2197_vm0, %v2196_v0 }
 0x17e   :  { %v1418_v13 = vadd.f32 %v1417_v19, %v1416_v56  ;;  %1950 = vmatprep.subr.mxu1 %v2196_v0 }
 0x17f   :  { %1951 = vmatpush3.msra.mxu1 %v1227_v21  ;;  %v1667_v21 = vld [vmem:[%s2554_s8 + $0x5] ss:$0 sm:$0xff] }
 0x180   :  { %v1419_v23 = vrot.slane %v1418_v13, 1  ;;  %1952 = vmatprep.subr.mxu1 %v2196_v0 }
 0x181   :  { %1953 = vmatpush3.msra.mxu1 %v1226_v22 }
 0x182   :  { %v1420_v25 = vadd.f32 %v1419_v23, %v1418_v13  ;;  %1954 = vmatprep.subr.mxu1 %v2196_v0 }
 0x183   :  { %1955 = vmatpush3.msra.mxu1 %v1225_v24 }
 0x184   :  { %v1421_v27 = vmul.f32 0.25, %v1420_v25  ;;  %1956 = vmatprep.subr.mxu1 %v2196_v0 }
 0x185   :  { %v2032_v29 = vpop.eup %2031  ;;  %1957 = vmatpush3.msra.mxu1 %v1224_v26 }
 0x186   :  { %v1180_v32 = vmul.f32 %v2032_v29, %v2439_v30  ;;  %v1422_v33 = vadd.f32 1e-05, %v1421_v27  ;;  %1958 = vmatprep.subr.mxu1 %v2196_v0  ;;  %v1471_v30 = vld [vmem:[#allocation10 + $0x170] sm:$0xff] }
 0x187   :  { %1959 = vmatpush3.msra.mxu1 %v1223_v28  ;;  %v1668_v28 = vld [vmem:[%s2555_s9] ss:$0 sm:$0xff] }
 0x188   :  { %v1189_v37 = vmul.f32 %v1648_v31, %v1180_v32  ;;  %2033 = vrsqrt.f32 %v1422_v33  ;;  %1960 = vmatprep.subr.mxu1 %v2196_v0 }
 0x189   :  { %1961 = vmatpush3.msra.mxu1 %v1222_v34 }
 0x18a   :  { %v1198_v39 = vadd.f32 %v1650_v35, %v1189_v37  ;;  %1962 = vmatprep.subr.mxu1 %v2196_v0 }
 0x18b   :  { %1963 = vmatpush3.msra.mxu1 %v1221_v38 }
 0x18c   :  { %1965 = vmatmul.mubr.msk.f32.vlgmr.msra.gmra.mxu1 %vm115_vm1, %v1198_v39  ;;  %1986 = vmatprep.subr.mxu1 %v2196_v0 }
 0x18d   :  { %1987 = vmatpush3.msra.mxu1 %v1472_v40  ;;  %2002 = vmatprep.mubr.msk.f32.mxu1 %vm2197_vm0, %v2196_v0 }
 0x18e   :  { %1988 = vmatprep.subr.mxu1 %v2196_v0 }
 0x18f   :  { %1989 = vmatpush3.msra.mxu1 %v1471_v30 }
 0x190   :  { %1990 = vmatprep.subr.mxu1 %v2196_v0 }
 0x191   :  { %1991 = vmatpush3.msra.mxu1 %v1470_v41 }
 0x192   :  { %1992 = vmatprep.subr.mxu1 %v2196_v0 }
 0x193   :  { %1993 = vmatpush3.msra.mxu1 %v1469_v36 }
 0x194   :  { %1994 = vmatprep.subr.mxu1 %v2196_v0 }
 0x195   :  { %v2034_v44 = vpop.eup %2033  ;;  %1995 = vmatpush3.msra.mxu1 %v1468_v42 }
 0x196   :  { %v1424_v46 = vmul.f32 %v2034_v44, %v2463_v3  ;;  %1996 = vmatprep.subr.mxu1 %v2196_v0 }
 0x197   :  { %1997 = vmatpush3.msra.mxu1 %v1467_v43 }
 0x198   :  { %v1433_v49 = vmul.f32 %v1659_v45, %v1424_v46  ;;  %1998 = vmatprep.subr.mxu1 %v2196_v0 }
 0x199   :  { %1999 = vmatpush3.msra.mxu1 %v1466_v47 }
 0x19a   :  { %v1442_v50 = vadd.f32 %v1661_v48, %v1433_v49  ;;  %2000 = vmatprep.subr.mxu1 %v2196_v0  ;;  %v1634_v0 = vld [vmem:[%s2554_s8 + $0x2] ss:$0 sm:$0xff] }
 0x19b   :  { %2001 = vmatpush3.msra.mxu1 %v1465_v20 }
 0x19c   :  { %2003 = vmatmul.mubr.msk.f32.vlgmr.msra.gmra.mxu1 %vm115_vm1, %v1442_v50 }
 0x1ac   :  { %v1316_v16 = vpop.permute.xlu1 %1315 }
 0x1c0   :  { %v1560_v22 = vpop.permute.xlu1 %1559 }
 0x20c   :  { %v324_v52 = vpop.f32.mrf.mxu1 }
 0x20d   :  { %v335_v53 = vadd.f32 %v1612_v51, %v324_v52  ;;  %v342_v15 = vmul.f32 %v340_v10, %v324_v52 }
 0x20e   :  { %v1814_v54 = vpop.f32.mrf.mxu1 }
 0x20f   :  { %336 = vst [vmem:[#allocation11] sm:$0xf] %v335_v53 }
 0x21c   :  { %v566_v57 = vpop.f32.mrf.mxu1 }
 0x21d   :  { %v578_v59 = vadd.f32 %v1623_v55, %v566_v57  ;;  %v586_v12 = vmul.f32 %v584_v8, %v566_v57 }
 0x21e   :  { %v1852_v60 = vpop.f32.mrf.mxu1 }
 0x21f   :  { %580 = vst [vmem:[#allocation11 + $0x4] sm:$0xf] %v578_v59  ;;  %v587_v17 = vadd.f32 %v586_v12, %v342_v15 }
 0x22c   :  { %v810_v61 = vpop.f32.mrf.mxu1 }
 0x22d   :  { %v822_v62 = vadd.f32 %v1634_v0, %v810_v61  ;;  %v830_v58 = vmul.f32 %v828_v11, %v810_v61 }
 0x22e   :  { %v1890_v63 = vpop.f32.mrf.mxu1 }
 0x22f   :  { %824 = vst [vmem:[#allocation11 + $0x8] sm:$0xf] %v822_v62  ;;  %v831_v18 = vadd.f32 %v830_v58, %v587_v17 }
 0x23c   :  { %v1054_v2 = vpop.f32.mrf.mxu1 }
 0x23d   :  { %v1066_v3 = vadd.f32 %v1645_v1, %v1054_v2  ;;  %v1074_v56 = vmul.f32 %v1072_v14, %v1054_v2 }
 0x23e   :  { %v1928_v4 = vpop.f32.mrf.mxu1 }
 0x23f   :  { %1068 = vst [vmem:[#allocation11 + $0xc] sm:$0xf] %v1066_v3  ;;  %v1075_v13 = vadd.f32 %v1074_v56, %v831_v18 }
 0x24c   :  { %v1298_v6 = vpop.f32.mrf.mxu1 }
 0x24d   :  { %v1310_v7 = vadd.f32 %v1656_v5, %v1298_v6  ;;  %v1318_v19 = vmul.f32 %v1316_v16, %v1298_v6 }
 0x24e   :  { %v1966_v9 = vpop.f32.mrf.mxu1 }
 0x24f   :  { %1312 = vst [vmem:[#allocation11 + $0x10] sm:$0xf] %v1310_v7  ;;  %v1319_v24 = vadd.f32 %v1318_v19, %v1075_v13 }
 0x25c   :  { %v1542_v23 = vpop.f32.mrf.mxu1 }
 0x25d   :  { %v1554_v25 = vadd.f32 %v1667_v21, %v1542_v23  ;;  %v1562_v26 = vmul.f32 %v1560_v22, %v1542_v23 }
 0x25e   :  { %v2004_v27 = vpop.f32.mrf.mxu1 }
 0x25f   :  { %1556 = vst [vmem:[#allocation11 + $0x14] sm:$0xf] %v1554_v25  ;;  %v1563_v29 = vadd.f32 %v1562_v26, %v1319_v24 }
 0x260   :  { %2146 = shalt.err (!%p2143_p1)
}
 0x261   :  { %1584 = dma.vmem_to_hbm [thread:$0]  %s1579_s7, 384, %s2556_s10, [#allocation4], %s2190_s1, %s2190_s1, %s2191_s13   ;;  %v1571_v31 = vadd.f32 %v1668_v28, %v1563_v29 }
 0x262   :  { %s2155_s9 = scalar_lea.vmem %s1592_s29, 64  ;;  %p2160_p3 = scmp.lt.s32.totalorder %s1592_s29, %s1592_s29 }
 0x263   :  { %1572 = vst [vmem:[#allocation12] sm:$0xf] %v1571_v31  ;;  %p2156_p2 = scmp.ne.s32.totalorder %s1592_s29, %s2155_s9  ;;  %p2161_p4 = scmp.lt.s32.totalorder %s2155_s9, %s2155_s9 }
 0x265   :  { %p2162_p5 = por %p2161_p4, %p2160_p3 }
 0x267   :  { %p2163_p6 = pnand %p2162_p5, %p2156_p2 }
 0x269   :  { %2166 = shalt.err (!%p2163_p6)
}
 0x26a   :  { %1594 = dma.vmem_to_hbm [thread:$0]  %s1592_s29, 64, %s2557_s11, [#allocation13]  }
 0x26b   :  { %2181 = dma.done.wait [#allocation4], 384  }
 0x26c   :  { %2182 = vsyncadd [#allocation4], 4294966912 }
 0x26d   :  { %2183 = dma.done.wait [#allocation13], 64  }
 0x26e   :  { %2184 = vsyncadd [#allocation13], 4294967232 }
 0x26f   :  { %1601 = vsyncpa [#allocation3], 1 }
 0x270   :  { %1602 = vsyncpa [#allocation6], 1 }
 0x271   :  { %1603 = vsyncpa [#allocation9], 1 }
 0x272   :  { %1604 = vsyncpa [#allocation4], 1 }
 0x273   :  { %1605 = vsyncpa [#allocation13], 1 }

</bundles_post_ra>
